<compile_context>
chip_gen: v5e
topology: v5e:2x2
jax: 0.10.0
libtpu: 0.0.40
codegen_flags: <defaults>
</compile_context>

<pallas_src>
import functools

import jax
import jax.numpy as jnp
from jax.experimental import pallas as pl
from jax.experimental.pallas import tpu as pltpu

LN_EPS = 1e-5   # nn.LayerNorm default
BN_EPS = 1e-5   # nn.BatchNorm2d default


# ----------------------------- in-kernel math -----------------------------

def _gelu_tanh(x):
    # tanh-form GELU: runs on the EUP (otherwise-idle VLIW slot) instead of
    # a ~10-op erf polynomial on the VPU.
    c = 0.7978845608028654  # sqrt(2/pi)
    return 0.5 * x * (1.0 + jnp.tanh(c * (x + 0.044715 * x * x * x)))


def _layernorm(x, w, b):
    # x: (R, C); w, b: (1, C); normalize over channels (last / lane dim)
    mu = jnp.mean(x, axis=-1, keepdims=True)
    var = jnp.mean(jnp.square(x - mu), axis=-1, keepdims=True)
    return (x - mu) * jax.lax.rsqrt(var + LN_EPS) * w + b


def _gcn_block_body(xf, abd_ref, wg_ref, bg_ref, t1, wt, bt, k_size):
    """One Gcn_block (residual=False), all samples flattened along rows.

    xf:      (N*V, C_in) f32
    abd_ref: Ref (K, N*V, N*V)  block-diagonal adjacency over the batch
    wg_ref:  Ref (K, C_in, C_out)  1x1 Gcn conv weight, BN#1 scale folded in
    bg_ref:  Ref (K, 1, C_out)     1x1 Gcn conv bias,   BN#1 scale folded in
    t1:      (1, C_out)            BN#1 shift (applied before ReLU)
    wt:      (C_out, C_out)        tcn 1x1 conv weight, BN#2 scale folded in
    bt:      (1, C_out)            tcn 1x1 conv bias,   BN#2 folded in
    """
    z = None
    for k in range(k_size):  # K is tiny & static -> unrolled
        # y_k = x @ Wg_k + bg_k   (single matmul over the whole flattened batch)
        yk = jnp.dot(xf, wg_ref[k], preferred_element_type=jnp.float32) + bg_ref[k]
        # z[w, c] += sum_v A_bd[k][v, w] * y_k[v, c]   (== per-sample A^T @ y_k)
        zk = jax.lax.dot_general(
            abd_ref[k], yk, (((0,), (0,)), ((), ())),
            preferred_element_type=jnp.float32)
        z = zk if z is None else z + zk
    # tcn: BN#1 (folded) -> ReLU -> Dropout(id) -> 1x1 conv -> BN#2 (folded) -> Dropout(id)
    h = jnp.maximum(z + t1, 0.0)
    h = jnp.dot(h, wt, preferred_element_type=jnp.float32) + bt
    # residual=False inside GCN_module's blocks
    return _gelu_tanh(h)


# ------------------------------- fused kernel -------------------------------

def _fused_kernel(x_ref, abd_ref, ln1w_ref, ln1b_ref,
                  wg1_ref, bg1_ref, t11_ref, wt1_ref, bt1_ref,
                  wg2_ref, bg2_ref, t12_ref, wt2_ref, bt2_ref,
                  ln2w_ref, ln2b_ref, o_ref, *, k_size):
    x = x_ref[...].astype(jnp.float32)                       # (N*V, dim), residual
    xn = _layernorm(x, ln1w_ref[...], ln1b_ref[...])         # norm_gcn1
    h1 = _gcn_block_body(xn, abd_ref, wg1_ref, bg1_ref,
                         t11_ref[...], wt1_ref[...], bt1_ref[...], k_size)
    h2 = _gcn_block_body(h1, abd_ref, wg2_ref, bg2_ref,
                         t12_ref[...], wt2_ref[...], bt2_ref[...], k_size)
    out = x + _layernorm(h2, ln2w_ref[...], ln2b_ref[...])   # res + norm_gcn2(x_gcn)
    o_ref[...] = out.astype(o_ref.dtype)


# ------------------------------- wrapper ------------------------------------

def _full_spec(a):
    nd = a.ndim
    return pl.BlockSpec(a.shape, lambda i, _nd=nd: (0,) * _nd)


def _fold_block(p, K):
    """Fold inference BatchNorm affines into the convs (host side, zero cost)."""
    c_in = p["wg"].shape[0]
    c_out = p["wt"].shape[1]
    s1, t1, s2, t2 = p["s1"], p["t1"], p["s2"], p["t2"]
    # (c_in, K*c_out) -> (K, c_in, c_out); BN#1 scale is a per-output-channel
    # column scale, which commutes with the A contraction (over joints).
    wg = jnp.transpose(p["wg"].reshape(c_in, K, c_out), (1, 0, 2)) * s1.reshape(1, 1, c_out)
    bg = p["bg"].reshape(K, c_out)[:, None, :] * s1.reshape(1, 1, c_out)    # (K, 1, c_out)
    wt = p["wt"] * s2                     # BN#2 scale folded as a column scale
    bt = p["bt"] * s2 + t2                # BN#2 shift folded into the bias
    return wg, bg, t1, wt, bt


def gcn_module_forward(x, A, ln1_w, ln1_b, ln2_w, ln2_b, p1, p2):
    N, V, dim = x.shape
    K = A.shape[0]

    # Host-side prep: BN folding, (K, C_in, C_out) conv layout, block-diag A.
    wg1, bg1, t11, wt1, bt1 = _fold_block(p1, K)
    wg2, bg2, t12, wt2, bt2 = _fold_block(p2, K)

    eye = jnp.eye(N, dtype=A.dtype)
    a_bd = jnp.einsum('kvw,ns->knvsw', A, eye).reshape(K, N * V, N * V)

    ln1w = ln1_w.reshape(1, dim)
    ln1b = ln1_b.reshape(1, dim)
    ln2w = ln2_w.reshape(1, dim)
    ln2b = ln2_b.reshape(1, dim)

    x_flat = x.reshape(N * V, dim)

    args = (x_flat, a_bd, ln1w, ln1b,
            wg1, bg1, t11, wt1, bt1,
            wg2, bg2, t12, wt2, bt2,
            ln2w, ln2b)

    out_flat = pl.pallas_call(
        functools.partial(_fused_kernel, k_size=K),
        out_shape=jax.ShapeDtypeStruct((N * V, dim), x.dtype),
        grid=(1,),
        in_specs=[_full_spec(a) for a in args],
        out_specs=pl.BlockSpec((N * V, dim), lambda i: (0, 0)),
        compiler_params=pltpu.CompilerParams(dimension_semantics=("arbitrary",)),
    )(*args)
    return out_flat.reshape(N, V, dim)


# ------------------------------ reference -----------------------------------

def _reference(x, A, ln1_w, ln1_b, ln2_w, ln2_b, p1, p2):
    hp = jax.lax.Precision.HIGHEST

    def ln(v, w, b):
        mu = v.mean(-1, keepdims=True)
        var = jnp.mean((v - mu) ** 2, -1, keepdims=True)
        return (v - mu) / jnp.sqrt(var + LN_EPS) * w + b

    def block(v, p):
        N, J, _ = v.shape
        c_out = p["wt"].shape[1]
        K = A.shape[0]
        y = jnp.einsum('njc,ck->njk', v, p["wg"], precision=hp) + p["bg"]
        y = y.reshape(N, J, K, c_out)
        z = jnp.einsum('nvkc,kvw->nwc', y, A, precision=hp)
        h = jnp.maximum(z * p["s1"] + p["t1"], 0.0)
        h = jnp.einsum('nwc,co->nwo', h, p["wt"], precision=hp) + p["bt"]
        h = h * p["s2"] + p["t2"]
        return 0.5 * h * (1.0 + jax.scipy.special.erf(h * 0.7071067811865476))

    g1 = block(ln(x, ln1_w, ln1_b), p1)
    g2 = block(g1, p2)
    return x + ln(g2, ln2_w, ln2_b)


# --------------------------------- main --------------------------------------

if __name__ == "__main__":
    N, J, dim, h_dim, K = 2, 17, 32, 64, 3   # hm36 graph: 17 joints, spatial K=3

    keys = iter(jax.random.split(jax.random.PRNGKey(0), 64))

    def nrm(shape, scale):
        return jax.random.normal(next(keys), shape, jnp.float32) * scale

    def unif(shape, lo, hi):
        return jax.random.uniform(next(keys), shape, jnp.float32, minval=lo, maxval=hi)

    x = jax.random.normal(next(keys), (N, J, dim), jnp.float32)
    # TODO(synk): Graph('hm36_gt','spatial') adjacency construction is replaced by a
    # deterministic synthetic A with the same (K, V, V) shape.
    A = jax.random.uniform(next(keys), (K, J, J), jnp.float32) / J

    # LayerNorms
    ln1_w = unif((dim,), 0.5, 1.5)
    ln1_b = nrm((dim,), 0.1)
    ln2_w = unif((dim,), 0.5, 1.5)
    ln2_b = nrm((dim,), 0.1)

    def make_block(c_in, c_out):
        # Gcn conv: torch weight (K*c_out, c_in, 1, 1) -> stored transposed (c_in, K*c_out)
        wg = nrm((c_in, K * c_out), 1.0 / (c_in ** 0.5))
        bg = nrm((1, K * c_out), 0.05)
        # BatchNorm #1 (inference) folded to scale/shift
        g1, b1 = unif((1, c_out), 0.5, 1.5), nrm((1, c_out), 0.1)
        rm1, rv1 = nrm((1, c_out), 0.1), unif((1, c_out), 0.5, 1.5)
        s1 = g1 / jnp.sqrt(rv1 + BN_EPS)
        t1 = b1 - rm1 * s1
        # tcn 1x1 conv: torch weight (c_out, c_out, 1, 1) -> stored transposed (in, out)
        wt = nrm((c_out, c_out), 1.0 / (c_out ** 0.5))
        bt = nrm((1, c_out), 0.05)
        # BatchNorm #2 (inference) folded
        g2, b2 = unif((1, c_out), 0.5, 1.5), nrm((1, c_out), 0.1)
        rm2, rv2 = nrm((1, c_out), 0.1), unif((1, c_out), 0.5, 1.5)
        s2 = g2 / jnp.sqrt(rv2 + BN_EPS)
        t2 = b2 - rm2 * s2
        return dict(wg=wg, bg=bg, s1=s1, t1=t1, wt=wt, bt=bt, s2=s2, t2=t2)

    p1 = make_block(dim, h_dim)     # gcn1: dim -> h_dim
    p2 = make_block(h_dim, dim)     # gcn2: h_dim -> dim

    out = gcn_module_forward(x, A, ln1_w, ln1_b, ln2_w, ln2_b, p1, p2)
    out = jax.block_until_ready(out)

    ref = _reference(x, A, ln1_w, ln1_b, ln2_w, ln2_b, p1, p2)

    assert out.shape == (N, J, dim)
    assert bool(jnp.all(jnp.isfinite(out)))
    assert bool(jnp.allclose(out, ref, rtol=1e-2, atol=1e-2))
    print("KERNEL_OK")
</pallas_src>

<mosaic_0001>
module attributes {stable_mosaic.version = 11 : i64} {
  func.func @_fused_kernel(%arg0: i32, %arg1: memref<34x32xf32, #tpu.memory_space<vmem>>, %arg2: memref<3x34x34xf32, #tpu.memory_space<vmem>>, %arg3: memref<1x32xf32, #tpu.memory_space<vmem>>, %arg4: memref<1x32xf32, #tpu.memory_space<vmem>>, %arg5: memref<3x32x64xf32, #tpu.memory_space<vmem>>, %arg6: memref<3x1x64xf32, #tpu.memory_space<vmem>>, %arg7: memref<1x64xf32, #tpu.memory_space<vmem>>, %arg8: memref<64x64xf32, #tpu.memory_space<vmem>>, %arg9: memref<1x64xf32, #tpu.memory_space<vmem>>, %arg10: memref<3x64x32xf32, #tpu.memory_space<vmem>>, %arg11: memref<3x1x32xf32, #tpu.memory_space<vmem>>, %arg12: memref<1x32xf32, #tpu.memory_space<vmem>>, %arg13: memref<32x32xf32, #tpu.memory_space<vmem>>, %arg14: memref<1x32xf32, #tpu.memory_space<vmem>>, %arg15: memref<1x32xf32, #tpu.memory_space<vmem>>, %arg16: memref<1x32xf32, #tpu.memory_space<vmem>>, %arg17: memref<34x32xf32, #tpu.memory_space<vmem>>) attributes {dimension_semantics = [#tpu.dimension_semantics<arbitrary>], iteration_bounds = array<i64: 1>, scalar_prefetch = 0 : i64, scratch_operands = 0 : i64, tpu.core_type = #tpu.core_type<tc>, window_params = [{pipeline_mode = #tpu.pipeline_mode<synchronous>, transform_indices = @transform_0, window_bounds = array<i64: 34, 32>}, {pipeline_mode = #tpu.pipeline_mode<synchronous>, transform_indices = @transform_1, window_bounds = array<i64: 3, 34, 34>}, {pipeline_mode = #tpu.pipeline_mode<synchronous>, transform_indices = @transform_2, window_bounds = array<i64: 1, 32>}, {pipeline_mode = #tpu.pipeline_mode<synchronous>, transform_indices = @transform_3, window_bounds = array<i64: 1, 32>}, {pipeline_mode = #tpu.pipeline_mode<synchronous>, transform_indices = @transform_4, window_bounds = array<i64: 3, 32, 64>}, {pipeline_mode = #tpu.pipeline_mode<synchronous>, transform_indices = @transform_5, window_bounds = array<i64: 3, 1, 64>}, {pipeline_mode = #tpu.pipeline_mode<synchronous>, transform_indices = @transform_6, window_bounds = array<i64: 1, 64>}, {pipeline_mode = #tpu.pipeline_mode<synchronous>, transform_indices = @transform_7, window_bounds = array<i64: 64, 64>}, {pipeline_mode = #tpu.pipeline_mode<synchronous>, transform_indices = @transform_8, window_bounds = array<i64: 1, 64>}, {pipeline_mode = #tpu.pipeline_mode<synchronous>, transform_indices = @transform_9, window_bounds = array<i64: 3, 64, 32>}, {pipeline_mode = #tpu.pipeline_mode<synchronous>, transform_indices = @transform_10, window_bounds = array<i64: 3, 1, 32>}, {pipeline_mode = #tpu.pipeline_mode<synchronous>, transform_indices = @transform_11, window_bounds = array<i64: 1, 32>}, {pipeline_mode = #tpu.pipeline_mode<synchronous>, transform_indices = @transform_12, window_bounds = array<i64: 32, 32>}, {pipeline_mode = #tpu.pipeline_mode<synchronous>, transform_indices = @transform_13, window_bounds = array<i64: 1, 32>}, {pipeline_mode = #tpu.pipeline_mode<synchronous>, transform_indices = @transform_14, window_bounds = array<i64: 1, 32>}, {pipeline_mode = #tpu.pipeline_mode<synchronous>, transform_indices = @transform_15, window_bounds = array<i64: 1, 32>}, {pipeline_mode = #tpu.pipeline_mode<synchronous>, transform_indices = @transform_16, window_bounds = array<i64: 34, 32>}]} {
    %c0 = arith.constant 0 : index
    %c0_0 = arith.constant 0 : index
    %0 = vector.load %arg1[%c0, %c0_0] : memref<34x32xf32, #tpu.memory_space<vmem>>, vector<34x32xf32>
    %c0_1 = arith.constant 0 : index
    %c0_2 = arith.constant 0 : index
    %1 = vector.load %arg3[%c0_1, %c0_2] : memref<1x32xf32, #tpu.memory_space<vmem>>, vector<1x32xf32>
    %c0_3 = arith.constant 0 : index
    %c0_4 = arith.constant 0 : index
    %2 = vector.load %arg4[%c0_3, %c0_4] : memref<1x32xf32, #tpu.memory_space<vmem>>, vector<1x32xf32>
    %cst = arith.constant dense<0.000000e+00> : vector<34xf32>
    %3 = vector.multi_reduction <add>, %0, %cst [1] : vector<34x32xf32> to vector<34xf32>
    %4 = vector.shape_cast %3 : vector<34xf32> to vector<34x1xf32>
    %cst_5 = arith.constant 3.200000e+01 : f32
    %5 = vector.broadcast %cst_5 : f32 to vector<34x1xf32>
    %6 = arith.divf %4, %5 : vector<34x1xf32>
    %7 = vector.broadcast %6 : vector<34x1xf32> to vector<34x32xf32>
    %8 = arith.subf %0, %7 : vector<34x32xf32>
    %9 = arith.mulf %8, %8 : vector<34x32xf32>
    %cst_6 = arith.constant dense<0.000000e+00> : vector<34xf32>
    %10 = vector.multi_reduction <add>, %9, %cst_6 [1] : vector<34x32xf32> to vector<34xf32>
    %11 = vector.shape_cast %10 : vector<34xf32> to vector<34x1xf32>
    %cst_7 = arith.constant 3.200000e+01 : f32
    %12 = vector.broadcast %cst_7 : f32 to vector<34x1xf32>
    %13 = arith.divf %11, %12 : vector<34x1xf32>
    %14 = vector.broadcast %6 : vector<34x1xf32> to vector<34x32xf32>
    %15 = arith.subf %0, %14 : vector<34x32xf32>
    %cst_8 = arith.constant 9.99999974E-6 : f32
    %16 = vector.broadcast %cst_8 : f32 to vector<34x1xf32>
    %17 = arith.addf %13, %16 : vector<34x1xf32>
    %18 = math.rsqrt %17 : vector<34x1xf32>
    %19 = vector.broadcast %18 : vector<34x1xf32> to vector<34x32xf32>
    %20 = arith.mulf %15, %19 : vector<34x32xf32>
    %21 = vector.broadcast %1 : vector<1x32xf32> to vector<34x32xf32>
    %22 = arith.mulf %20, %21 : vector<34x32xf32>
    %23 = vector.broadcast %2 : vector<1x32xf32> to vector<34x32xf32>
    %24 = arith.addf %22, %23 : vector<34x32xf32>
    %c0_9 = arith.constant 0 : index
    %c0_10 = arith.constant 0 : index
    %25 = vector.load %arg7[%c0_9, %c0_10] : memref<1x64xf32, #tpu.memory_space<vmem>>, vector<1x64xf32>
    %c0_11 = arith.constant 0 : index
    %c0_12 = arith.constant 0 : index
    %26 = vector.load %arg8[%c0_11, %c0_12] : memref<64x64xf32, #tpu.memory_space<vmem>>, vector<64x64xf32>
    %c0_13 = arith.constant 0 : index
    %c0_14 = arith.constant 0 : index
    %27 = vector.load %arg9[%c0_13, %c0_14] : memref<1x64xf32, #tpu.memory_space<vmem>>, vector<1x64xf32>
    %c0_15 = arith.constant 0 : index
    %c0_16 = arith.constant 0 : index
    %c0_17 = arith.constant 0 : index
    %28 = vector.load %arg5[%c0_15, %c0_16, %c0_17] : memref<3x32x64xf32, #tpu.memory_space<vmem>>, vector<1x32x64xf32>
    %29 = vector.shape_cast %28 : vector<1x32x64xf32> to vector<32x64xf32>
    %cst_18 = arith.constant dense<0.000000e+00> : vector<34x64xf32>
    %30 = tpu.matmul %24, %29, %cst_18 {dimension_numbers = #tpu.dot_dimension_numbers<[1], [0], [0], [1], [0, 0, 1, 1], [], []>} : vector<34x32xf32>, vector<32x64xf32>, vector<34x64xf32> -> vector<34x64xf32>
    %c0_19 = arith.constant 0 : index
    %c0_20 = arith.constant 0 : index
    %c0_21 = arith.constant 0 : index
    %31 = vector.load %arg6[%c0_19, %c0_20, %c0_21] : memref<3x1x64xf32, #tpu.memory_space<vmem>>, vector<1x1x64xf32>
    %32 = vector.shape_cast %31 : vector<1x1x64xf32> to vector<1x64xf32>
    %33 = vector.broadcast %32 : vector<1x64xf32> to vector<34x64xf32>
    %34 = arith.addf %30, %33 : vector<34x64xf32>
    %c0_22 = arith.constant 0 : index
    %c0_23 = arith.constant 0 : index
    %c0_24 = arith.constant 0 : index
    %35 = vector.load %arg2[%c0_22, %c0_23, %c0_24] : memref<3x34x34xf32, #tpu.memory_space<vmem>>, vector<1x34x34xf32>
    %36 = vector.shape_cast %35 : vector<1x34x34xf32> to vector<34x34xf32>
    %cst_25 = arith.constant dense<0.000000e+00> : vector<34x64xf32>
    %37 = tpu.matmul %36, %34, %cst_25 {dimension_numbers = #tpu.dot_dimension_numbers<[0], [0], [1], [1], [0, 1, 1, 1], [], []>} : vector<34x34xf32>, vector<34x64xf32>, vector<34x64xf32> -> vector<34x64xf32>
    %c1 = arith.constant 1 : index
    %c0_26 = arith.constant 0 : index
    %c0_27 = arith.constant 0 : index
    %38 = vector.load %arg5[%c1, %c0_26, %c0_27] : memref<3x32x64xf32, #tpu.memory_space<vmem>>, vector<1x32x64xf32>
    %39 = vector.shape_cast %38 : vector<1x32x64xf32> to vector<32x64xf32>
    %cst_28 = arith.constant dense<0.000000e+00> : vector<34x64xf32>
    %40 = tpu.matmul %24, %39, %cst_28 {dimension_numbers = #tpu.dot_dimension_numbers<[1], [0], [0], [1], [0, 0, 1, 1], [], []>} : vector<34x32xf32>, vector<32x64xf32>, vector<34x64xf32> -> vector<34x64xf32>
    %c1_29 = arith.constant 1 : index
    %c0_30 = arith.constant 0 : index
    %c0_31 = arith.constant 0 : index
    %41 = vector.load %arg6[%c1_29, %c0_30, %c0_31] : memref<3x1x64xf32, #tpu.memory_space<vmem>>, vector<1x1x64xf32>
    %42 = vector.shape_cast %41 : vector<1x1x64xf32> to vector<1x64xf32>
    %43 = vector.broadcast %42 : vector<1x64xf32> to vector<34x64xf32>
    %44 = arith.addf %40, %43 : vector<34x64xf32>
    %c1_32 = arith.constant 1 : index
    %c0_33 = arith.constant 0 : index
    %c0_34 = arith.constant 0 : index
    %45 = vector.load %arg2[%c1_32, %c0_33, %c0_34] : memref<3x34x34xf32, #tpu.memory_space<vmem>>, vector<1x34x34xf32>
    %46 = vector.shape_cast %45 : vector<1x34x34xf32> to vector<34x34xf32>
    %cst_35 = arith.constant dense<0.000000e+00> : vector<34x64xf32>
    %47 = tpu.matmul %46, %44, %cst_35 {dimension_numbers = #tpu.dot_dimension_numbers<[0], [0], [1], [1], [0, 1, 1, 1], [], []>} : vector<34x34xf32>, vector<34x64xf32>, vector<34x64xf32> -> vector<34x64xf32>
    %48 = arith.addf %37, %47 : vector<34x64xf32>
    %c2 = arith.constant 2 : index
    %c0_36 = arith.constant 0 : index
    %c0_37 = arith.constant 0 : index
    %49 = vector.load %arg5[%c2, %c0_36, %c0_37] : memref<3x32x64xf32, #tpu.memory_space<vmem>>, vector<1x32x64xf32>
    %50 = vector.shape_cast %49 : vector<1x32x64xf32> to vector<32x64xf32>
    %cst_38 = arith.constant dense<0.000000e+00> : vector<34x64xf32>
    %51 = tpu.matmul %24, %50, %cst_38 {dimension_numbers = #tpu.dot_dimension_numbers<[1], [0], [0], [1], [0, 0, 1, 1], [], []>} : vector<34x32xf32>, vector<32x64xf32>, vector<34x64xf32> -> vector<34x64xf32>
    %c2_39 = arith.constant 2 : index
    %c0_40 = arith.constant 0 : index
    %c0_41 = arith.constant 0 : index
    %52 = vector.load %arg6[%c2_39, %c0_40, %c0_41] : memref<3x1x64xf32, #tpu.memory_space<vmem>>, vector<1x1x64xf32>
    %53 = vector.shape_cast %52 : vector<1x1x64xf32> to vector<1x64xf32>
    %54 = vector.broadcast %53 : vector<1x64xf32> to vector<34x64xf32>
    %55 = arith.addf %51, %54 : vector<34x64xf32>
    %c2_42 = arith.constant 2 : index
    %c0_43 = arith.constant 0 : index
    %c0_44 = arith.constant 0 : index
    %56 = vector.load %arg2[%c2_42, %c0_43, %c0_44] : memref<3x34x34xf32, #tpu.memory_space<vmem>>, vector<1x34x34xf32>
    %57 = vector.shape_cast %56 : vector<1x34x34xf32> to vector<34x34xf32>
    %cst_45 = arith.constant dense<0.000000e+00> : vector<34x64xf32>
    %58 = tpu.matmul %57, %55, %cst_45 {dimension_numbers = #tpu.dot_dimension_numbers<[0], [0], [1], [1], [0, 1, 1, 1], [], []>} : vector<34x34xf32>, vector<34x64xf32>, vector<34x64xf32> -> vector<34x64xf32>
    %59 = arith.addf %48, %58 : vector<34x64xf32>
    %60 = vector.broadcast %25 : vector<1x64xf32> to vector<34x64xf32>
    %61 = arith.addf %59, %60 : vector<34x64xf32>
    %cst_46 = arith.constant 0.000000e+00 : f32
    %62 = vector.broadcast %cst_46 : f32 to vector<34x64xf32>
    %63 = arith.maximumf %61, %62 : vector<34x64xf32>
    %cst_47 = arith.constant dense<0.000000e+00> : vector<34x64xf32>
    %64 = tpu.matmul %63, %26, %cst_47 {dimension_numbers = #tpu.dot_dimension_numbers<[1], [0], [0], [1], [0, 0, 1, 1], [], []>} : vector<34x64xf32>, vector<64x64xf32>, vector<34x64xf32> -> vector<34x64xf32>
    %65 = vector.broadcast %27 : vector<1x64xf32> to vector<34x64xf32>
    %66 = arith.addf %64, %65 : vector<34x64xf32>
    %cst_48 = arith.constant 5.000000e-01 : f32
    %67 = vector.broadcast %cst_48 : f32 to vector<34x64xf32>
    %68 = arith.mulf %67, %66 : vector<34x64xf32>
    %cst_49 = arith.constant 4.471500e-02 : f32
    %69 = vector.broadcast %cst_49 : f32 to vector<34x64xf32>
    %70 = arith.mulf %69, %66 : vector<34x64xf32>
    %71 = arith.mulf %70, %66 : vector<34x64xf32>
    %72 = arith.mulf %71, %66 : vector<34x64xf32>
    %73 = arith.addf %66, %72 : vector<34x64xf32>
    %cst_50 = arith.constant 0.797884583 : f32
    %74 = vector.broadcast %cst_50 : f32 to vector<34x64xf32>
    %75 = arith.mulf %74, %73 : vector<34x64xf32>
    %76 = math.tanh %75 : vector<34x64xf32>
    %cst_51 = arith.constant 1.000000e+00 : f32
    %77 = vector.broadcast %cst_51 : f32 to vector<34x64xf32>
    %78 = arith.addf %77, %76 : vector<34x64xf32>
    %79 = arith.mulf %68, %78 : vector<34x64xf32>
    %c0_52 = arith.constant 0 : index
    %c0_53 = arith.constant 0 : index
    %80 = vector.load %arg12[%c0_52, %c0_53] : memref<1x32xf32, #tpu.memory_space<vmem>>, vector<1x32xf32>
    %c0_54 = arith.constant 0 : index
    %c0_55 = arith.constant 0 : index
    %81 = vector.load %arg13[%c0_54, %c0_55] : memref<32x32xf32, #tpu.memory_space<vmem>>, vector<32x32xf32>
    %c0_56 = arith.constant 0 : index
    %c0_57 = arith.constant 0 : index
    %82 = vector.load %arg14[%c0_56, %c0_57] : memref<1x32xf32, #tpu.memory_space<vmem>>, vector<1x32xf32>
    %c0_58 = arith.constant 0 : index
    %c0_59 = arith.constant 0 : index
    %c0_60 = arith.constant 0 : index
    %83 = vector.load %arg10[%c0_58, %c0_59, %c0_60] : memref<3x64x32xf32, #tpu.memory_space<vmem>>, vector<1x64x32xf32>
    %84 = vector.shape_cast %83 : vector<1x64x32xf32> to vector<64x32xf32>
    %cst_61 = arith.constant dense<0.000000e+00> : vector<34x32xf32>
    %85 = tpu.matmul %79, %84, %cst_61 {dimension_numbers = #tpu.dot_dimension_numbers<[1], [0], [0], [1], [0, 0, 1, 1], [], []>} : vector<34x64xf32>, vector<64x32xf32>, vector<34x32xf32> -> vector<34x32xf32>
    %c0_62 = arith.constant 0 : index
    %c0_63 = arith.constant 0 : index
    %c0_64 = arith.constant 0 : index
    %86 = vector.load %arg11[%c0_62, %c0_63, %c0_64] : memref<3x1x32xf32, #tpu.memory_space<vmem>>, vector<1x1x32xf32>
    %87 = vector.shape_cast %86 : vector<1x1x32xf32> to vector<1x32xf32>
    %88 = vector.broadcast %87 : vector<1x32xf32> to vector<34x32xf32>
    %89 = arith.addf %85, %88 : vector<34x32xf32>
    %c0_65 = arith.constant 0 : index
    %c0_66 = arith.constant 0 : index
    %c0_67 = arith.constant 0 : index
    %90 = vector.load %arg2[%c0_65, %c0_66, %c0_67] : memref<3x34x34xf32, #tpu.memory_space<vmem>>, vector<1x34x34xf32>
    %91 = vector.shape_cast %90 : vector<1x34x34xf32> to vector<34x34xf32>
    %cst_68 = arith.constant dense<0.000000e+00> : vector<34x32xf32>
    %92 = tpu.matmul %91, %89, %cst_68 {dimension_numbers = #tpu.dot_dimension_numbers<[0], [0], [1], [1], [0, 1, 1, 1], [], []>} : vector<34x34xf32>, vector<34x32xf32>, vector<34x32xf32> -> vector<34x32xf32>
    %c1_69 = arith.constant 1 : index
    %c0_70 = arith.constant 0 : index
    %c0_71 = arith.constant 0 : index
    %93 = vector.load %arg10[%c1_69, %c0_70, %c0_71] : memref<3x64x32xf32, #tpu.memory_space<vmem>>, vector<1x64x32xf32>
    %94 = vector.shape_cast %93 : vector<1x64x32xf32> to vector<64x32xf32>
    %cst_72 = arith.constant dense<0.000000e+00> : vector<34x32xf32>
    %95 = tpu.matmul %79, %94, %cst_72 {dimension_numbers = #tpu.dot_dimension_numbers<[1], [0], [0], [1], [0, 0, 1, 1], [], []>} : vector<34x64xf32>, vector<64x32xf32>, vector<34x32xf32> -> vector<34x32xf32>
    %c1_73 = arith.constant 1 : index
    %c0_74 = arith.constant 0 : index
    %c0_75 = arith.constant 0 : index
    %96 = vector.load %arg11[%c1_73, %c0_74, %c0_75] : memref<3x1x32xf32, #tpu.memory_space<vmem>>, vector<1x1x32xf32>
    %97 = vector.shape_cast %96 : vector<1x1x32xf32> to vector<1x32xf32>
    %98 = vector.broadcast %97 : vector<1x32xf32> to vector<34x32xf32>
    %99 = arith.addf %95, %98 : vector<34x32xf32>
    %c1_76 = arith.constant 1 : index
    %c0_77 = arith.constant 0 : index
    %c0_78 = arith.constant 0 : index
    %100 = vector.load %arg2[%c1_76, %c0_77, %c0_78] : memref<3x34x34xf32, #tpu.memory_space<vmem>>, vector<1x34x34xf32>
    %101 = vector.shape_cast %100 : vector<1x34x34xf32> to vector<34x34xf32>
    %cst_79 = arith.constant dense<0.000000e+00> : vector<34x32xf32>
    %102 = tpu.matmul %101, %99, %cst_79 {dimension_numbers = #tpu.dot_dimension_numbers<[0], [0], [1], [1], [0, 1, 1, 1], [], []>} : vector<34x34xf32>, vector<34x32xf32>, vector<34x32xf32> -> vector<34x32xf32>
    %103 = arith.addf %92, %102 : vector<34x32xf32>
    %c2_80 = arith.constant 2 : index
    %c0_81 = arith.constant 0 : index
    %c0_82 = arith.constant 0 : index
    %104 = vector.load %arg10[%c2_80, %c0_81, %c0_82] : memref<3x64x32xf32, #tpu.memory_space<vmem>>, vector<1x64x32xf32>
    %105 = vector.shape_cast %104 : vector<1x64x32xf32> to vector<64x32xf32>
    %cst_83 = arith.constant dense<0.000000e+00> : vector<34x32xf32>
    %106 = tpu.matmul %79, %105, %cst_83 {dimension_numbers = #tpu.dot_dimension_numbers<[1], [0], [0], [1], [0, 0, 1, 1], [], []>} : vector<34x64xf32>, vector<64x32xf32>, vector<34x32xf32> -> vector<34x32xf32>
    %c2_84 = arith.constant 2 : index
    %c0_85 = arith.constant 0 : index
    %c0_86 = arith.constant 0 : index
    %107 = vector.load %arg11[%c2_84, %c0_85, %c0_86] : memref<3x1x32xf32, #tpu.memory_space<vmem>>, vector<1x1x32xf32>
    %108 = vector.shape_cast %107 : vector<1x1x32xf32> to vector<1x32xf32>
    %109 = vector.broadcast %108 : vector<1x32xf32> to vector<34x32xf32>
    %110 = arith.addf %106, %109 : vector<34x32xf32>
    %c2_87 = arith.constant 2 : index
    %c0_88 = arith.constant 0 : index
    %c0_89 = arith.constant 0 : index
    %111 = vector.load %arg2[%c2_87, %c0_88, %c0_89] : memref<3x34x34xf32, #tpu.memory_space<vmem>>, vector<1x34x34xf32>
    %112 = vector.shape_cast %111 : vector<1x34x34xf32> to vector<34x34xf32>
    %cst_90 = arith.constant dense<0.000000e+00> : vector<34x32xf32>
    %113 = tpu.matmul %112, %110, %cst_90 {dimension_numbers = #tpu.dot_dimension_numbers<[0], [0], [1], [1], [0, 1, 1, 1], [], []>} : vector<34x34xf32>, vector<34x32xf32>, vector<34x32xf32> -> vector<34x32xf32>
    %114 = arith.addf %103, %113 : vector<34x32xf32>
    %115 = vector.broadcast %80 : vector<1x32xf32> to vector<34x32xf32>
    %116 = arith.addf %114, %115 : vector<34x32xf32>
    %cst_91 = arith.constant 0.000000e+00 : f32
    %117 = vector.broadcast %cst_91 : f32 to vector<34x32xf32>
    %118 = arith.maximumf %116, %117 : vector<34x32xf32>
    %cst_92 = arith.constant dense<0.000000e+00> : vector<34x32xf32>
    %119 = tpu.matmul %118, %81, %cst_92 {dimension_numbers = #tpu.dot_dimension_numbers<[1], [0], [0], [1], [0, 0, 1, 1], [], []>} : vector<34x32xf32>, vector<32x32xf32>, vector<34x32xf32> -> vector<34x32xf32>
    %120 = vector.broadcast %82 : vector<1x32xf32> to vector<34x32xf32>
    %121 = arith.addf %119, %120 : vector<34x32xf32>
    %cst_93 = arith.constant 5.000000e-01 : f32
    %122 = vector.broadcast %cst_93 : f32 to vector<34x32xf32>
    %123 = arith.mulf %122, %121 : vector<34x32xf32>
    %cst_94 = arith.constant 4.471500e-02 : f32
    %124 = vector.broadcast %cst_94 : f32 to vector<34x32xf32>
    %125 = arith.mulf %124, %121 : vector<34x32xf32>
    %126 = arith.mulf %125, %121 : vector<34x32xf32>
    %127 = arith.mulf %126, %121 : vector<34x32xf32>
    %128 = arith.addf %121, %127 : vector<34x32xf32>
    %cst_95 = arith.constant 0.797884583 : f32
    %129 = vector.broadcast %cst_95 : f32 to vector<34x32xf32>
    %130 = arith.mulf %129, %128 : vector<34x32xf32>
    %131 = math.tanh %130 : vector<34x32xf32>
    %cst_96 = arith.constant 1.000000e+00 : f32
    %132 = vector.broadcast %cst_96 : f32 to vector<34x32xf32>
    %133 = arith.addf %132, %131 : vector<34x32xf32>
    %134 = arith.mulf %123, %133 : vector<34x32xf32>
    %c0_97 = arith.constant 0 : index
    %c0_98 = arith.constant 0 : index
    %135 = vector.load %arg15[%c0_97, %c0_98] : memref<1x32xf32, #tpu.memory_space<vmem>>, vector<1x32xf32>
    %c0_99 = arith.constant 0 : index
    %c0_100 = arith.constant 0 : index
    %136 = vector.load %arg16[%c0_99, %c0_100] : memref<1x32xf32, #tpu.memory_space<vmem>>, vector<1x32xf32>
    %cst_101 = arith.constant dense<0.000000e+00> : vector<34xf32>
    %137 = vector.multi_reduction <add>, %134, %cst_101 [1] : vector<34x32xf32> to vector<34xf32>
    %138 = vector.shape_cast %137 : vector<34xf32> to vector<34x1xf32>
    %cst_102 = arith.constant 3.200000e+01 : f32
    %139 = vector.broadcast %cst_102 : f32 to vector<34x1xf32>
    %140 = arith.divf %138, %139 : vector<34x1xf32>
    %141 = vector.broadcast %140 : vector<34x1xf32> to vector<34x32xf32>
    %142 = arith.subf %134, %141 : vector<34x32xf32>
    %143 = arith.mulf %142, %142 : vector<34x32xf32>
    %cst_103 = arith.constant dense<0.000000e+00> : vector<34xf32>
    %144 = vector.multi_reduction <add>, %143, %cst_103 [1] : vector<34x32xf32> to vector<34xf32>
    %145 = vector.shape_cast %144 : vector<34xf32> to vector<34x1xf32>
    %cst_104 = arith.constant 3.200000e+01 : f32
    %146 = vector.broadcast %cst_104 : f32 to vector<34x1xf32>
    %147 = arith.divf %145, %146 : vector<34x1xf32>
    %148 = vector.broadcast %140 : vector<34x1xf32> to vector<34x32xf32>
    %149 = arith.subf %134, %148 : vector<34x32xf32>
    %cst_105 = arith.constant 9.99999974E-6 : f32
    %150 = vector.broadcast %cst_105 : f32 to vector<34x1xf32>
    %151 = arith.addf %147, %150 : vector<34x1xf32>
    %152 = math.rsqrt %151 : vector<34x1xf32>
    %153 = vector.broadcast %152 : vector<34x1xf32> to vector<34x32xf32>
    %154 = arith.mulf %149, %153 : vector<34x32xf32>
    %155 = vector.broadcast %135 : vector<1x32xf32> to vector<34x32xf32>
    %156 = arith.mulf %154, %155 : vector<34x32xf32>
    %157 = vector.broadcast %136 : vector<1x32xf32> to vector<34x32xf32>
    %158 = arith.addf %156, %157 : vector<34x32xf32>
    %159 = arith.addf %0, %158 : vector<34x32xf32>
    %c0_106 = arith.constant 0 : index
    %c0_107 = arith.constant 0 : index
    %160 = vector.load %arg17[%c0_106, %c0_107] : memref<34x32xf32, #tpu.memory_space<vmem>>, vector<34x32xf32>
    tpu.vector_store %arg17[%c0_106, %c0_107], %159 {strides = array<i32>} : memref<34x32xf32, #tpu.memory_space<vmem>>, vector<34x32xf32>,
    return
  }
  func.func @transform_0(%arg0: i32) -> (i32, i32) {
    %c0_i32 = arith.constant 0 : i32
    %c0_i32_0 = arith.constant 0 : i32
    %c0_i32_1 = arith.constant 0 : i32
    return %c0_i32, %c0_i32_0 : i32, i32
  }
  func.func @transform_1(%arg0: i32) -> (i32, i32, i32) {
    %c0_i32 = arith.constant 0 : i32
    %c0_i32_0 = arith.constant 0 : i32
    %c0_i32_1 = arith.constant 0 : i32
    %c0_i32_2 = arith.constant 0 : i32
    return %c0_i32, %c0_i32_0, %c0_i32_1 : i32, i32, i32
  }
  func.func @transform_2(%arg0: i32) -> (i32, i32) {
    %c0_i32 = arith.constant 0 : i32
    %c0_i32_0 = arith.constant 0 : i32
    %c0_i32_1 = arith.constant 0 : i32
    return %c0_i32, %c0_i32_0 : i32, i32
  }
  func.func @transform_3(%arg0: i32) -> (i32, i32) {
    %c0_i32 = arith.constant 0 : i32
    %c0_i32_0 = arith.constant 0 : i32
    %c0_i32_1 = arith.constant 0 : i32
    return %c0_i32, %c0_i32_0 : i32, i32
  }
  func.func @transform_4(%arg0: i32) -> (i32, i32, i32) {
    %c0_i32 = arith.constant 0 : i32
    %c0_i32_0 = arith.constant 0 : i32
    %c0_i32_1 = arith.constant 0 : i32
    %c0_i32_2 = arith.constant 0 : i32
    return %c0_i32, %c0_i32_0, %c0_i32_1 : i32, i32, i32
  }
  func.func @transform_5(%arg0: i32) -> (i32, i32, i32) {
    %c0_i32 = arith.constant 0 : i32
    %c0_i32_0 = arith.constant 0 : i32
    %c0_i32_1 = arith.constant 0 : i32
    %c0_i32_2 = arith.constant 0 : i32
    return %c0_i32, %c0_i32_0, %c0_i32_1 : i32, i32, i32
  }
  func.func @transform_6(%arg0: i32) -> (i32, i32) {
    %c0_i32 = arith.constant 0 : i32
    %c0_i32_0 = arith.constant 0 : i32
    %c0_i32_1 = arith.constant 0 : i32
    return %c0_i32, %c0_i32_0 : i32, i32
  }
  func.func @transform_7(%arg0: i32) -> (i32, i32) {
    %c0_i32 = arith.constant 0 : i32
    %c0_i32_0 = arith.constant 0 : i32
    %c0_i32_1 = arith.constant 0 : i32
    return %c0_i32, %c0_i32_0 : i32, i32
  }
  func.func @transform_8(%arg0: i32) -> (i32, i32) {
    %c0_i32 = arith.constant 0 : i32
    %c0_i32_0 = arith.constant 0 : i32
    %c0_i32_1 = arith.constant 0 : i32
    return %c0_i32, %c0_i32_0 : i32, i32
  }
  func.func @transform_9(%arg0: i32) -> (i32, i32, i32) {
    %c0_i32 = arith.constant 0 : i32
    %c0_i32_0 = arith.constant 0 : i32
    %c0_i32_1 = arith.constant 0 : i32
    %c0_i32_2 = arith.constant 0 : i32
    return %c0_i32, %c0_i32_0, %c0_i32_1 : i32, i32, i32
  }
  func.func @transform_10(%arg0: i32) -> (i32, i32, i32) {
    %c0_i32 = arith.constant 0 : i32
    %c0_i32_0 = arith.constant 0 : i32
    %c0_i32_1 = arith.constant 0 : i32
    %c0_i32_2 = arith.constant 0 : i32
    return %c0_i32, %c0_i32_0, %c0_i32_1 : i32, i32, i32
  }
  func.func @transform_11(%arg0: i32) -> (i32, i32) {
    %c0_i32 = arith.constant 0 : i32
    %c0_i32_0 = arith.constant 0 : i32
    %c0_i32_1 = arith.constant 0 : i32
    return %c0_i32, %c0_i32_0 : i32, i32
  }
  func.func @transform_12(%arg0: i32) -> (i32, i32) {
    %c0_i32 = arith.constant 0 : i32
    %c0_i32_0 = arith.constant 0 : i32
    %c0_i32_1 = arith.constant 0 : i32
    return %c0_i32, %c0_i32_0 : i32, i32
  }
  func.func @transform_13(%arg0: i32) -> (i32, i32) {
    %c0_i32 = arith.constant 0 : i32
    %c0_i32_0 = arith.constant 0 : i32
    %c0_i32_1 = arith.constant 0 : i32
    return %c0_i32, %c0_i32_0 : i32, i32
  }
  func.func @transform_14(%arg0: i32) -> (i32, i32) {
    %c0_i32 = arith.constant 0 : i32
    %c0_i32_0 = arith.constant 0 : i32
    %c0_i32_1 = arith.constant 0 : i32
    return %c0_i32, %c0_i32_0 : i32, i32
  }
  func.func @transform_15(%arg0: i32) -> (i32, i32) {
    %c0_i32 = arith.constant 0 : i32
    %c0_i32_0 = arith.constant 0 : i32
    %c0_i32_1 = arith.constant 0 : i32
    return %c0_i32, %c0_i32_0 : i32, i32
  }
  func.func @transform_16(%arg0: i32) -> (i32, i32) {
    %c0_i32 = arith.constant 0 : i32
    %c0_i32_0 = arith.constant 0 : i32
    %c0_i32_1 = arith.constant 0 : i32
    return %c0_i32, %c0_i32_0 : i32, i32
  }
}

</mosaic_0001>

<bundles_post_ra>
// kernel: tpu_custom_call.1
= control target key start
LH: loop header
LB: loop body
LE: loop exit
PB: predicated region body
PF: predicated region fallthrough
CT: control target
= control target key end

     0   :  { %vm60_vm0 = vcmask 261120   ;;  %vm73_vm1 = vcmask 254976   ;;  %v1425_v10 = vmov 32.0   ;;  %s2063_s0 = inlined_call_operand.vmem [shape: f32[34,32], index: 0, kind: input, shape index: {}]   ;;  %s2064_s2 = inlined_call_operand.vmem [shape: f32[1,32], index: 2, kind: input, shape index: {}]   ;;  %s2065_s3 = inlined_call_operand.vmem [shape: f32[1,32], index: 3, kind: input, shape index: {}]   ;;  %s2066_s5 = inlined_call_operand.vmem [shape: f32[3,1,64], index: 5, kind: input, shape index: {}]   ;;  %s2067_s4 = inlined_call_operand.vmem [shape: f32[3,32,64], index: 4, kind: input, shape index: {}]   ;;  %s2068_s1 = inlined_call_operand.vmem [shape: f32[3,34,34], index: 1, kind: input, shape index: {}]   ;;  %s2069_s6 = inlined_call_operand.vmem [shape: f32[1,64], index: 6, kind: input, shape index: {}]   ;;  %s2070_s7 = inlined_call_operand.vmem [shape: f32[64,64], index: 7, kind: input, shape index: {}]   ;;  %s2071_s8 = inlined_call_operand.vmem [shape: f32[1,64], index: 8, kind: input, shape index: {}]   ;;  %s2072_s10 = inlined_call_operand.vmem [shape: f32[3,1,32], index: 10, kind: input, shape index: {}]   ;;  %s2073_s9 = inlined_call_operand.vmem [shape: f32[3,64,32], index: 9, kind: input, shape index: {}]   ;;  %s2074_s11 = inlined_call_operand.vmem [shape: f32[1,32], index: 11, kind: input, shape index: {}]   ;;  %s2075_s13 = inlined_call_operand.vmem [shape: f32[1,32], index: 13, kind: input, shape index: {}]   ;;  %s2076_s12 = inlined_call_operand.vmem [shape: f32[32,32], index: 12, kind: input, shape index: {}]   ;;  %s2077_s14 = inlined_call_operand.vmem [shape: f32[1,32], index: 14, kind: input, shape index: {}]   ;;  %s2078_s15 = inlined_call_operand.vmem [shape: f32[1,32], index: 15, kind: input, shape index: {}]   ;;  %s2079_s16 = inlined_call_operand.vmem [shape: f32[34,32], index: 16, kind: output, shape index: {}]  }
   0x1   :  { %2081 = sst [smem:[#allocation2_spill]] %s2063_s0  ;;  %1378 = vrcp.f32 %v1425_v10  ;;  %v208_v42 = vld [vmem:[%s2067_s4 + $0x18] sm:$0xff]  ;;  %v207_v44 = vld [vmem:[%s2067_s4 + $0x10] sm:$0xff]  ;;  %v206_v46 = vld [vmem:[%s2067_s4 + $0x8] sm:$0xff] }
   0x2   :  { %s2082_s23 = sld [smem:[#allocation2_spill]]  ;;  %v1248_v43 = vld [vmem:[%s2067_s4 + $0x38] sm:$0xff]  ;;  %240 = vmatpush.msra.mxu0 %v208_v42  ;;  %v1247_v45 = vld [vmem:[%s2067_s4 + $0x30] sm:$0xff]  ;;  %1354 = vmatpush.msra.mxu2 %v208_v42  ;;  %v1246_v47 = vld [vmem:[%s2067_s4 + $0x28] sm:$0xff] }
   0x3   :  { %287 = vmatpush.msra.mxu1 %v1248_v43  ;;  %1358 = vmatpush.msra.mxu3 %v1248_v43  ;;  %v205_v48 = vld [vmem:[%s2067_s4] sm:$0xff] }
   0x4   :  { %241 = vmatpush.msra.mxu0 %v207_v44  ;;  %1355 = vmatpush.msra.mxu2 %v207_v44  ;;  %v1245_v49 = vld [vmem:[%s2067_s4 + $0x20] sm:$0xff] }
   0x5   :  { %288 = vmatpush.msra.mxu1 %v1247_v45  ;;  %1359 = vmatpush.msra.mxu3 %v1247_v45 }
   0x6   :  { %242 = vmatpush.msra.mxu0 %v206_v46  ;;  %1356 = vmatpush.msra.mxu2 %v206_v46 }
   0x7   :  { %v1379_v11 = vpop.eup %1378  ;;  %289 = vmatpush.msra.mxu1 %v1246_v47  ;;  %1360 = vmatpush.msra.mxu3 %v1246_v47 }
   0x8   :  { %v55_v0 = vld [vmem:[%s2082_s23 + $0x10] sm:$0xff]  ;;  %v53_v1 = vld [vmem:[%s2082_s23] sm:$0xff]  ;;  %v56_v6 = vld [vmem:[%s2082_s23 + $0x18] sm:$0xff]  ;;  %v78_v12 = vmul.f32 32.0, %v1379_v11  ;;  %vm82_vm2 = vweird.f32 %v1379_v11  ;;  %243 = vmatpush.msra.mxu0 %v205_v48  ;;  %1357 = vmatpush.msra.mxu2 %v205_v48 }
   0x9   :  { %v67_v2 = vsel %vm60_vm0, %v55_v0, 0.0  ;;  %v61_v3 = vsel %vm60_vm0, %v53_v1, 0.0  ;;  %v57_v4 = vld [vmem:[%s2082_s23 + $0x20] sm:$0x3]  ;;  %v54_v7 = vld [vmem:[%s2082_s23 + $0x8] sm:$0xff]  ;;  %v70_v8 = vsel %vm60_vm0, %v56_v6, 0.0  ;;  %290 = vmatpush.msra.mxu1 %v1245_v49  ;;  %1361 = vmatpush.msra.mxu3 %v1245_v49 }
   0xa   :  { %68 = vadd.xlane.f32.xlu1 %v67_v2  ;;  %62 = vadd.xlane.f32.xlu0 %v61_v3  ;;  %v74_v5 = vsel %vm73_vm1, %v57_v4, 0.0  ;;  %v64_v9 = vsel %vm60_vm0, %v54_v7, 0.0  ;;  %v79_v13 = vsub.f32 1.0, %v78_v12  ;;  %v1275_v3 = vld [vmem:[%s2067_s4 + $0x58] sm:$0xff] }
   0xb   :  { %75 = vadd.xlane.f32.xlu2 %v74_v5  ;;  %501 = vmatpush.msrb.mxu0 %v1275_v3  ;;  %v262_v3 = vld [vmem:[%s2068_s1 + $0x10] sm:$0xff] }
   0xc   :  { %v80_v14 = vmul.f32 %v1379_v11, %v79_v13  ;;  %v1272_v13 = vld [vmem:[%s2067_s4 + $0x40] sm:$0xff] }
   0xe   :  { %v81_v15 = vadd.f32 %v1379_v11, %v80_v14 }
  0x10   :  { %v1531_v16 = vsel %vm82_vm2, %v1379_v11, %v81_v15 }
  0x12   :  { %71 = vadd.xlane.f32.xlu1 %v70_v8  ;;  %65 = vadd.xlane.f32.xlu0 %v64_v9  ;;  %v1273_v9 = vld [vmem:[%s2067_s4 + $0x48] sm:$0xff] }
  0x7d   :  { %v69_v17 = vpop.xlane.xlu1 %68  ;;  %v63_v18 = vpop.xlane.xlu0 %62 }
  0x7e   :  { %v86_v19 = vmul.f32 %v1531_v16, %v69_v17  ;;  %v84_v20 = vmul.f32 %v1531_v16, %v63_v18  ;;  %v76_v25 = vpop.xlane.xlu2 %75 }
  0x7f   :  { %v88_v32 = vmul.f32 %v1531_v16, %v76_v25 }
  0x80   :  { %v1535_v21 = vsub.f32 %v55_v0, %v86_v19  ;;  %v1537_v22 = vsub.f32 %v53_v1, %v84_v20 }
  0x81   :  { %v1552_v35 = vsub.f32 %v57_v4, %v88_v32  ;;  %v1274_v4 = vld [vmem:[%s2067_s4 + $0x50] sm:$0xff] }
  0x82   :  { %v96_v23 = vmul.f32 %v1535_v21, %v1535_v21  ;;  %v94_v24 = vmul.f32 %v1537_v22, %v1537_v22  ;;  %502 = vmatpush.msrb.mxu0 %v1274_v4 }
  0x83   :  { %v98_v40 = vmul.f32 %v1552_v35, %v1552_v35 }
  0x84   :  { %v105_v26 = vsel %vm60_vm0, %v96_v23, 0.0  ;;  %v99_v27 = vsel %vm60_vm0, %v94_v24, 0.0  ;;  %503 = vmatpush.msrb.mxu0 %v1273_v9  ;;  %v1286_v9 = vld [vmem:[%s2068_s1 + $0x70] sm:$0x3] }
  0x85   :  { %106 = vadd.xlane.f32.xlu1 %v105_v26  ;;  %v72_v28 = vpop.xlane.xlu1 %71  ;;  %100 = vadd.xlane.f32.xlu2 %v99_v27  ;;  %v66_v29 = vpop.xlane.xlu0 %65  ;;  %v111_v41 = vsel %vm73_vm1, %v98_v40, 0.0  ;;  %v1625_v26 = vld [vmem:[%s2064_s2] ss:$0 sm:$0xff] }
  0x86   :  { %v87_v30 = vmul.f32 %v1531_v16, %v72_v28  ;;  %v85_v31 = vmul.f32 %v1531_v16, %v66_v29  ;;  %504 = vmatpush.msrb.mxu0 %v1272_v13  ;;  %v1256_v29 = vld [vmem:[%s2068_s1 + $0x30] sm:$0xff] }
  0x88   :  { %v1548_v33 = vsub.f32 %v56_v6, %v87_v30  ;;  %v1550_v34 = vsub.f32 %v54_v7, %v85_v31  ;;  %v1255_v6 = vld [vmem:[%s2068_s1 + $0x28] sm:$0xff]  ;;  %v1282_v30 = vld [vmem:[%s2068_s1 + $0x50] sm:$0xff] }
  0x8a   :  { %v97_v36 = vmul.f32 %v1548_v33, %v1548_v33  ;;  %v95_v37 = vmul.f32 %v1550_v34, %v1550_v34 }
  0x8c   :  { %v108_v38 = vsel %vm60_vm0, %v97_v36, 0.0  ;;  %v102_v39 = vsel %vm60_vm0, %v95_v37, 0.0  ;;  %v1365_v36 = vld [vmem:[%s2065_s3] ss:$0 sm:$0xff] }
  0x8d   :  { %109 = vadd.xlane.f32.xlu2 %v108_v38  ;;  %103 = vadd.xlane.f32.xlu0 %v102_v39  ;;  %v260_v38 = vld [vmem:[%s2068_s1] sm:$0xff] }
  0x95   :  { %112 = vadd.xlane.f32.xlu0 %v111_v41 }
  0xb6   :  { %397 = vxpose.xlu2.b32.start [1/5] (short) (narrow) %v260_v38, 40 }
  0xbe   :  { %527 = vxpose.xlu0.b32.start [1/5] (short) (narrow) %v1282_v30, 40 }
  0xbf   :  { %313 = vxpose.xlu1.b32.start [1/5] (short) (narrow) %v1255_v6, 40 }
  0xc7   :  { %314 = vxpose.xlu1.b32.cont [2/5] (short) (narrow) %v1256_v29, 40 }
  0xf8   :  { %v107_v50 = vpop.xlane.xlu1 %106  ;;  %v101_v51 = vpop.xlane.xlu2 %100 }
  0xf9   :  { %v116_v52 = vmul.f32 %v107_v50, %v1531_v16  ;;  %v114_v53 = vmul.f32 %v101_v51, %v1531_v16 }
  0xfb   :  { %v121_v54 = vadd.f32 1e-05, %v116_v52  ;;  %v119_v55 = vadd.f32 1e-05, %v114_v53  ;;  %v1257_v53 = vld [vmem:[%s2068_s1 + $0x38] sm:$0xff] }
  0xfc   :  { %315 = vxpose.xlu1.b32.cont [3/5] (short) (narrow) %v1257_v53, 40 }
  0xfd   :  { %1380 = vrsqrt.f32 %v121_v54  ;;  %vm150_vm3 = vweird.f32 %v121_v54  ;;  %vm130_vm7 = vweird.f32 %v119_v55 }
  0xfe   :  { %1382 = vrsqrt.f32 %v119_v55 }
 0x100   :  { %v110_v56 = vpop.xlane.xlu2 %109  ;;  %v104_v57 = vpop.xlane.xlu0 %103 }
 0x101   :  { %v117_v58 = vmul.f32 %v110_v56, %v1531_v16  ;;  %v115_v59 = vmul.f32 %v104_v57, %v1531_v16 }
 0x103   :  { %v1381_v60 = vpop.eup %1380  ;;  %v1591_v61 = vadd.f32 1e-05, %v117_v58  ;;  %v1593_v62 = vadd.f32 1e-05, %v115_v59 }
 0x104   :  { %v1383_v63 = vpop.eup %1382  ;;  %v145_v0 = vmul.f32 %v1381_v60, %v121_v54  ;;  %vm151_vm4 = vweird.f32 %v1381_v60  ;;  %v1283_v54 = vld [vmem:[%s2068_s1 + $0x58] sm:$0xff] }
 0x105   :  { %v125_v1 = vmul.f32 %v1383_v63, %v119_v55  ;;  %1384 = vrsqrt.f32 %v1591_v61  ;;  %vm1613_vm5 = vmor %vm150_vm3, %vm151_vm4  ;;  %vm131_vm6 = vweird.f32 %v1383_v63  ;;  %vm160_vm9 = vweird.f32 %v1591_v61  ;;  %v261_v55 = vld [vmem:[%s2068_s1 + $0x8] sm:$0xff]  ;;  %528 = vxpose.xlu0.b32.cont [2/5] (short) (narrow) %v1283_v54, 40 }
 0x106   :  { %v146_v2 = vmul.f32 %v1381_v60, %v145_v0  ;;  %1386 = vrsqrt.f32 %v1593_v62  ;;  %vm132_vm8 = vmor %vm130_vm7, %vm131_vm6  ;;  %vm140_vm13 = vweird.f32 %v1593_v62  ;;  %398 = vxpose.xlu2.b32.cont [2/5] (short) (narrow) %v261_v55, 40  ;;  %vm361_vm4 = vcmask 1041408  }
 0x107   :  { %v126_v5 = vmul.f32 %v1383_v63, %v125_v1  ;;  %vm630_vm6 = vcmask 523264  }
 0x108   :  { %v147_v7 = vmul.f32 0.5, %v146_v2  ;;  %v113_v8 = vpop.xlane.xlu0 %112  ;;  %v1284_v2 = vld [vmem:[%s2068_s1 + $0x60] sm:$0xff] }
 0x109   :  { %v127_v10 = vmul.f32 0.5, %v126_v5  ;;  %v118_v11 = vmul.f32 %v113_v8, %v1531_v16  ;;  %v263_v8 = vld [vmem:[%s2068_s1 + $0x18] sm:$0xff] }
 0x10a   :  { %v148_v12 = vsub.f32 1.5, %v147_v7  ;;  %v1259_v7 = vld [vmem:[%s2068_s1 + $0x48] sm:$0x3] }
 0x10b   :  { %v1385_v14 = vpop.eup %1384  ;;  %v128_v17 = vsub.f32 1.5, %v127_v10  ;;  %v1617_v18 = vadd.f32 1e-05, %v118_v11  ;;  %v264_v10 = vld [vmem:[%s2068_s1 + $0x20] sm:$0x3] }
 0x10c   :  { %v1387_v19 = vpop.eup %1386  ;;  %v149_v20 = vmul.f32 %v1381_v60, %v148_v12  ;;  %v155_v23 = vmul.f32 %v1385_v14, %v1591_v61  ;;  %vm161_vm10 = vweird.f32 %v1385_v14 }
 0x10d   :  { %v129_v24 = vmul.f32 %v1383_v63, %v128_v17  ;;  %v135_v25 = vmul.f32 %v1387_v19, %v1593_v62  ;;  %1388 = vrsqrt.f32 %v1617_v18  ;;  %vm141_vm11 = vweird.f32 %v1387_v19  ;;  %vm1646_vm12 = vmor %vm160_vm9, %vm161_vm10  ;;  %529 = vxpose.xlu0.b32.cont [3/5] (short) (narrow) %v1284_v2, 40  ;;  %v198_v2 = vld [vmem:[%s2070_s7 + $0x10] sm:$0xff] }
 0x10e   :  { %v153_v27 = vsel %vm1613_vm5, %v1381_v60, %v149_v20  ;;  %v156_v28 = vmul.f32 %v1385_v14, %v155_v23  ;;  %vm142_vm14 = vmor %vm140_vm13, %vm141_vm11  ;;  %vm170_vm15 = vweird.f32 %v1617_v18  ;;  %399 = vxpose.xlu2.b32.cont [3/5] (short) (narrow) %v262_v3, 40  ;;  %v1367_v20 = vld [vmem:[%s2066_s5 + $0x1] ss:$0 sm:$0xff]  ;;  %vm345_vm5 = vcmask 277504   ;;  %v197_v3 = vld [vmem:[%s2070_s7 + $0x8] sm:$0xff] }
 0x10f   :  { %v133_v31 = vsel %vm132_vm8, %v1383_v63, %v129_v24  ;;  %v136_v32 = vmul.f32 %v1387_v19, %v135_v25  ;;  %v176_v37 = vmul.f32 %v153_v27, %v1535_v21 }
 0x110   :  { %v157_v39 = vmul.f32 0.5, %v156_v28  ;;  %v174_v40 = vmul.f32 %v133_v31, %v1537_v22 }
 0x111   :  { %v137_v41 = vmul.f32 0.5, %v136_v32  ;;  %v184_v42 = vmul.f32 %v1625_v26, %v176_v37 }
 0x112   :  { %v158_v43 = vsub.f32 1.5, %v157_v39  ;;  %v182_v21 = vmul.f32 %v1625_v26, %v174_v40 }
 0x113   :  { %v1389_v44 = vpop.eup %1388  ;;  %v138_v46 = vsub.f32 1.5, %v137_v41  ;;  %v192_v47 = vadd.f32 %v1365_v36, %v184_v42 }
 0x114   :  { %v159_v48 = vmul.f32 %v1385_v14, %v158_v43  ;;  %v165_v22 = vmul.f32 %v1389_v44, %v1617_v18  ;;  %v190_v49 = vadd.f32 %v1365_v36, %v182_v21  ;;  %vm171_vm2 = vweird.f32 %v1389_v44 }
 0x115   :  { %v139_v50 = vmul.f32 %v1387_v19, %v138_v46  ;;  %1252 = vmatmul.msk.f32.vlgmr.msra.gmra.mxu3 %vm60_vm0, %v192_v47  ;;  %vm172_vm3 = vmor %vm170_vm15, %vm171_vm2 }
 0x116   :  { %v163_v51 = vsel %vm1646_vm12, %v1385_v14, %v159_v48  ;;  %v166_v52 = vmul.f32 %v1389_v44, %v165_v22  ;;  %1240 = vmatmul.msk.f32.vlgmr.msra.gmra.mxu0 %vm60_vm0, %v190_v49  ;;  %1250 = vmatmul.msk.f32.vlgmr.msra.gmra.mxu1 %vm60_vm0, %v190_v49 }
 0x117   :  { %v143_v56 = vsel %vm142_vm14, %v1387_v19, %v139_v50  ;;  %v177_v57 = vmul.f32 %v163_v51, %v1548_v33  ;;  %400 = vxpose.xlu2.b32.cont [4/5] (short) (narrow) %v263_v8, 40  ;;  %v1366_v19 = vld [vmem:[%s2066_s5] ss:$0 sm:$0xff] }
 0x118   :  { %v167_v58 = vmul.f32 0.5, %v166_v52  ;;  %v175_v59 = vmul.f32 %v143_v56, %v1550_v34  ;;  %v1258_v34 = vld [vmem:[%s2068_s1 + $0x40] sm:$0xff] }
 0x119   :  { %v185_v60 = vmul.f32 %v1625_v26, %v177_v57  ;;  %316 = vxpose.xlu1.b32.cont [4/5] (short) (narrow) %v1258_v34, 40  ;;  %v199_v34 = vld [vmem:[%s2070_s7 + $0x18] sm:$0xff] }
 0x11a   :  { %v168_v61 = vsub.f32 1.5, %v167_v58  ;;  %v183_v62 = vmul.f32 %v1625_v26, %v175_v59 }
 0x11b   :  { %v193_v63 = vadd.f32 %v1365_v36, %v185_v60  ;;  %v203_v60 = vld [vmem:[%s2070_s7 + $0x38] sm:$0xff] }
 0x11c   :  { %v169_v0 = vmul.f32 %v1389_v44, %v168_v61  ;;  %v191_v1 = vadd.f32 %v1365_v36, %v183_v62  ;;  %v202_v61 = vld [vmem:[%s2070_s7 + $0x30] sm:$0xff]  ;;  %v201_v62 = vld [vmem:[%s2070_s7 + $0x28] sm:$0xff] }
 0x11d   :  { %1243 = vmatmul.msk.f32.vlgmr.msra.gmra.mxu2 %vm60_vm0, %v193_v63  ;;  %1253 = vmatmul.msk.f32.gmra.mxu3 %vm60_vm0, %v193_v63 }
 0x11e   :  { %v173_v33 = vsel %vm172_vm3, %v1389_v44, %v169_v0  ;;  %1241 = vmatmul.msk.f32.gmra.mxu0 %vm60_vm0, %v191_v1  ;;  %1251 = vmatmul.msk.f32.gmra.mxu1 %vm60_vm0, %v191_v1 }
 0x11f   :  { %v178_v4 = vmul.f32 %v173_v33, %v1552_v35  ;;  %v1285_v35 = vld [vmem:[%s2068_s1 + $0x68] sm:$0xff]  ;;  %401 = vxpose.xlu2.b32.end [5/5] (short) (narrow) %v264_v10, 40  ;;  %v200_v33 = vld [vmem:[%s2070_s7 + $0x20] sm:$0xff] }
 0x120   :  { %530 = vxpose.xlu0.b32.cont [4/5] (short) (narrow) %v1285_v35, 40 }
 0x121   :  { %v186_v5 = vmul.f32 %v1625_v26, %v178_v4  ;;  %317 = vxpose.xlu1.b32.end [5/5] (short) (narrow) %v1259_v7, 40  ;;  %v196_v4 = vld [vmem:[%s2070_s7] sm:$0xff] }
 0x123   :  { %v194_v6 = vadd.f32 %v1365_v36, %v186_v5 }
 0x125   :  { %1244 = vmatmul.msk.f32.gmra.mxu2 %vm60_vm0, %v194_v6  ;;  %1254 = vmatmul.msk.f32.gmra.mxu3 %vm60_vm0, %v194_v6 }
 0x126   :  { %1242 = vmatmul.msk.f32.gmra.mxu0 %vm60_vm0, %v192_v47 }
 0x128   :  { %531 = vxpose.xlu0.b32.end [5/5] (short) (narrow) %v1286_v9, 40  ;;  %v1369_v9 = vld [vmem:[%s2069_s6] ss:$0 sm:$0xff] }
 0x12e   :  { %1277 = vmatmul.msk.f32.vlgmr.msrb.gmra.mxu0 %vm60_vm0, %v190_v49  ;;  %v1368_v49 = vld [vmem:[%s2066_s5 + $0x2] ss:$0 sm:$0xff] }
 0x136   :  { %1278 = vmatmul.msk.f32.gmra.mxu0 %vm60_vm0, %v191_v1 }
 0x13e   :  { %1279 = vmatmul.msk.f32.gmra.mxu0 %vm60_vm0, %v192_v47 }
 0x146   :  { %1280 = vmatmul.msk.f32.gmra.mxu0 %vm60_vm0, %v193_v63 }
 0x14e   :  { %1281 = vmatmul.msk.f32.gmra.mxu0 %vm60_vm0, %v194_v6 }
 0x193   :  { %v245_v11 = vpop.f32.mrf.mxu0  ;;  %v292_v17 = vpop.f32.mrf.mxu1 }
 0x194   :  { %v246_v40 = vadd.f32 %v1366_v19, %v245_v11  ;;  %v293_v41 = vadd.f32 %v1367_v20, %v292_v17 }
 0x198   :  { %v298_v12 = vpop.f32.mrf.mxu3  ;;  %v1719_v32 = vpop.trf.xlu2 }
 0x199   :  { %v299_v36 = vadd.f32 %v1367_v20, %v298_v12 }
 0x19b   :  { %v248_v13 = vpop.f32.mrf.mxu0  ;;  %v295_v27 = vpop.f32.mrf.mxu1 }
 0x19c   :  { %v249_v38 = vadd.f32 %v1366_v19, %v248_v13  ;;  %v296_v39 = vadd.f32 %v1367_v20, %v295_v27 }
 0x1a0   :  { %v254_v14 = vpop.f32.mrf.mxu2  ;;  %v301_v15 = vpop.f32.mrf.mxu3 }
 0x1a1   :  { %v255_v28 = vadd.f32 %v1366_v19, %v254_v14  ;;  %v302_v29 = vadd.f32 %v1367_v20, %v301_v15  ;;  %v1727_v21 = vpop.trf.xlu2 }
 0x1a3   :  { %v251_v18 = vpop.f32.mrf.mxu0 }
 0x1a4   :  { %v252_v37 = vadd.f32 %v1366_v19, %v251_v18 }
 0x1a5   :  { %v1717_v31 = vpop.trf.xlu1 }
 0x1a8   :  { %v257_v23 = vpop.f32.mrf.mxu2  ;;  %v304_v24 = vpop.f32.mrf.mxu3 }
 0x1a9   :  { %v258_v25 = vadd.f32 %v1366_v19, %v257_v23  ;;  %v305_v26 = vadd.f32 %v1367_v20, %v304_v24  ;;  %v1735_v46 = vpop.trf.xlu2 }
 0x1ab   :  { %v506_v30 = vpop.f32.mrf.mxu0  ;;  %1260 = vmatpush.msk.msrb.mxu2 %vm361_vm4, %v305_v26  ;;  %1266 = vmatpush.msk.msrb.mxu3 %vm361_vm4, %v258_v25 }
 0x1ac   :  { %v1748_v52 = vpop.trf.xlu0  ;;  %v507_v58 = vadd.f32 %v1368_v49, %v506_v30 }
 0x1ad   :  { %377 = vmatpush.msrb.mxu2 %v302_v29  ;;  %459 = vmatpush.msrb.mxu3 %v255_v28  ;;  %v1725_v43 = vpop.trf.xlu1 }
 0x1af   :  { %378 = vmatpush.msrb.mxu2 %v299_v36  ;;  %460 = vmatpush.msrb.mxu3 %v252_v37 }
 0x1b1   :  { %379 = vmatpush.msrb.mxu2 %v296_v39  ;;  %461 = vmatpush.msrb.mxu3 %v249_v38  ;;  %v1743_v22 = vpop.trf.xlu2 }
 0x1b3   :  { %v509_v42 = vpop.f32.mrf.mxu0  ;;  %380 = vmatpush.msrb.mxu2 %v293_v41  ;;  %462 = vmatpush.msrb.mxu3 %v246_v40 }
 0x1b4   :  { %1261 = vmatmul.msk.f32.vlgmr.msrb.gmra.mxu2 %vm345_vm5, %v1717_v31  ;;  %1267 = vmatmul.msk.f32.vlgmr.msrb.gmra.mxu3 %vm345_vm5, %v1719_v32  ;;  %v510_v56 = vadd.f32 %v1368_v49, %v509_v42  ;;  %v1763_v59 = vpop.trf.xlu0 }
 0x1b5   :  { %v1733_v45 = vpop.trf.xlu1  ;;  %654 = vmatpush.msra.mxu2 %v203_v60  ;;  %v734_v60 = vld [vmem:[%s2073_s9 + $0x28] sm:$0xff] }
 0x1b7   :  { %655 = vmatpush.msra.mxu2 %v202_v61  ;;  %v1308_v61 = vld [vmem:[%s2073_s9 + $0x68] sm:$0xff] }
 0x1b9   :  { %v1757_v57 = vpop.trf.xlu2  ;;  %656 = vmatpush.msra.mxu2 %v201_v62  ;;  %v733_v62 = vld [vmem:[%s2073_s9 + $0x20] sm:$0xff] }
 0x1bb   :  { %v512_v44 = vpop.f32.mrf.mxu0  ;;  %657 = vmatpush.msra.mxu2 %v200_v33  ;;  %v1307_v33 = vld [vmem:[%s2073_s9 + $0x60] sm:$0xff] }
 0x1bc   :  { %1262 = vmatmul.msk.f32.gmra.mxu2 %vm345_vm5, %v1725_v43  ;;  %1268 = vmatmul.msk.f32.gmra.mxu3 %vm345_vm5, %v1727_v21  ;;  %v513_v54 = vadd.f32 %v1368_v49, %v512_v44  ;;  %v1778_v63 = vpop.trf.xlu0 }
 0x1bd   :  { %v1741_v48 = vpop.trf.xlu1  ;;  %658 = vmatpush.msra.mxu2 %v199_v34  ;;  %v732_v34 = vld [vmem:[%s2073_s9 + $0x18] sm:$0xff] }
 0x1bf   :  { %659 = vmatpush.msra.mxu2 %v198_v2  ;;  %v1306_v2 = vld [vmem:[%s2073_s9 + $0x58] sm:$0xff] }
 0x1c1   :  { %660 = vmatpush.msra.mxu2 %v197_v3  ;;  %v731_v3 = vld [vmem:[%s2073_s9 + $0x10] sm:$0xff] }
 0x1c3   :  { %v515_v47 = vpop.f32.mrf.mxu0  ;;  %661 = vmatpush.msra.mxu2 %v196_v4  ;;  %v1305_v4 = vld [vmem:[%s2073_s9 + $0x50] sm:$0xff] }
 0x1c4   :  { %1263 = vmatmul.msk.f32.gmra.mxu2 %vm345_vm5, %v1733_v45  ;;  %1269 = vmatmul.msk.f32.gmra.mxu3 %vm345_vm5, %v1735_v46  ;;  %v516_v53 = vadd.f32 %v1368_v49, %v515_v47  ;;  %v1782_v0 = vpop.trf.xlu0 }
 0x1c5   :  { %v1755_v55 = vpop.trf.xlu1 }
 0x1cb   :  { %v518_v50 = vpop.f32.mrf.mxu0 }
 0x1cc   :  { %v519_v51 = vadd.f32 %v1368_v49, %v518_v50  ;;  %1264 = vmatmul.msk.f32.gmra.mxu2 %vm345_vm5, %v1741_v48  ;;  %1270 = vmatmul.msk.f32.gmra.mxu3 %vm345_vm5, %v1743_v22  ;;  %v1786_v1 = vpop.trf.xlu0 }
 0x1ce   :  { %1287 = vmatpush.msk.msrb.mxu1 %vm361_vm4, %v519_v51 }
 0x1d0   :  { %589 = vmatpush.msrb.mxu1 %v516_v53  ;;  %v736_v53 = vld [vmem:[%s2073_s9 + $0x38] sm:$0xff] }
 0x1d1   :  { %764 = vmatpush.msra.mxu3 %v736_v53 }
 0x1d2   :  { %590 = vmatpush.msrb.mxu1 %v513_v54  ;;  %v1310_v54 = vld [vmem:[%s2073_s9 + $0x78] sm:$0xff] }
 0x1d3   :  { %810 = vmatpush.msra.mxu0 %v1310_v54  ;;  %v1330_v54 = vld [vmem:[%s2073_s9 + $0x88] sm:$0xff] }
 0x1d4   :  { %591 = vmatpush.msrb.mxu1 %v510_v56  ;;  %1265 = vmatmul.msk.f32.gmra.mxu2 %vm345_vm5, %v1755_v55  ;;  %v735_v56 = vld [vmem:[%s2073_s9 + $0x30] sm:$0xff] }
 0x1d5   :  { %1271 = vmatmul.msk.f32.gmra.mxu3 %vm345_vm5, %v1757_v57 }
 0x1d6   :  { %592 = vmatpush.msrb.mxu1 %v507_v58  ;;  %v1309_v58 = vld [vmem:[%s2073_s9 + $0x70] sm:$0xff]  ;;  %765 = vmatpush.msra.mxu3 %v735_v56 }
 0x1d7   :  { %1288 = vmatmul.msk.f32.vlgmr.msrb.gmra.mxu1 %vm345_vm5, %v1748_v52  ;;  %811 = vmatpush.msra.mxu0 %v1309_v58 }
 0x1d8   :  { %766 = vmatpush.msra.mxu3 %v734_v60 }
 0x1d9   :  { %812 = vmatpush.msra.mxu0 %v1308_v61 }
 0x1da   :  { %767 = vmatpush.msra.mxu3 %v733_v62 }
 0x1db   :  { %813 = vmatpush.msra.mxu0 %v1307_v33  ;;  %v1329_v33 = vld [vmem:[%s2073_s9 + $0x80] sm:$0xff] }
 0x1dc   :  { %768 = vmatpush.msra.mxu3 %v732_v34 }
 0x1dd   :  { %814 = vmatpush.msra.mxu0 %v1306_v2 }
 0x1de   :  { %769 = vmatpush.msra.mxu3 %v731_v3 }
 0x1df   :  { %1289 = vmatmul.msk.f32.gmra.mxu1 %vm345_vm5, %v1763_v59  ;;  %815 = vmatpush.msra.mxu0 %v1305_v4 }
 0x1e7   :  { %1290 = vmatmul.msk.f32.gmra.mxu1 %vm345_vm5, %v1778_v63 }
 0x1ef   :  { %1291 = vmatmul.msk.f32.gmra.mxu1 %vm345_vm5, %v1782_v0 }
 0x1f7   :  { %1292 = vmatmul.msk.f32.gmra.mxu1 %vm345_vm5, %v1786_v1 }
 0x237   :  { %v382_v5 = vpop.f32.mrf.mxu2  ;;  %v464_v6 = vpop.f32.mrf.mxu3 }
 0x238   :  { %v465_v8 = vadd.f32 %v464_v6, %v382_v5  ;;  %v730_v5 = vld [vmem:[%s2073_s9 + $0x8] sm:$0xff] }
 0x239   :  { %v1304_v6 = vld [vmem:[%s2073_s9 + $0x48] sm:$0xff]  ;;  %770 = vmatpush.msra.mxu3 %v730_v5 }
 0x23a   :  { %816 = vmatpush.msra.mxu0 %v1304_v6 }
 0x23f   :  { %v385_v7 = vpop.f32.mrf.mxu2  ;;  %v467_v35 = vpop.f32.mrf.mxu3 }
 0x240   :  { %v468_v14 = vadd.f32 %v467_v35, %v385_v7  ;;  %v729_v7 = vld [vmem:[%s2073_s9] sm:$0xff] }
 0x241   :  { %v1303_v35 = vld [vmem:[%s2073_s9 + $0x40] sm:$0xff]  ;;  %771 = vmatpush.msra.mxu3 %v729_v7 }
 0x242   :  { %817 = vmatpush.msra.mxu0 %v1303_v35 }
 0x247   :  { %v388_v15 = vpop.f32.mrf.mxu2  ;;  %v470_v17 = vpop.f32.mrf.mxu3 }
 0x248   :  { %v471_v24 = vadd.f32 %v470_v17, %v388_v15 }
 0x24f   :  { %v391_v25 = vpop.f32.mrf.mxu2  ;;  %v473_v27 = vpop.f32.mrf.mxu3 }
 0x250   :  { %v474_v36 = vadd.f32 %v473_v27, %v391_v25  ;;  %v1336_v25 = vld [vmem:[%s2073_s9 + $0xb8] sm:$0xff] }
 0x251   :  { %926 = vmatpush.msrb.mxu3 %v1336_v25 }
 0x254   :  { %v594_v10 = vpop.f32.mrf.mxu1 }
 0x255   :  { %v609_v11 = vadd.f32 %v594_v10, %v465_v8  ;;  %v1370_v8 = vld [vmem:[%s2071_s8] ss:$0 sm:$0xff] }
 0x257   :  { %v617_v12 = vadd.f32 %v1369_v9, %v609_v11  ;;  %v394_v39 = vpop.f32.mrf.mxu2 }
 0x258   :  { %v476_v40 = vpop.f32.mrf.mxu3 }
 0x259   :  { %v622_v13 = vmax.f32 %v617_v12, 0.0  ;;  %v477_v44 = vadd.f32 %v476_v40, %v394_v39  ;;  %v1333_v40 = vld [vmem:[%s2073_s9 + $0xa0] sm:$0xff] }
 0x25b   :  { %1293 = vmatmul.msk.f32.vlgmr.msra.gmra.mxu2 %vm630_vm6, %v622_v13 }
 0x25c   :  { %v597_v18 = vpop.f32.mrf.mxu1 }
 0x25d   :  { %v610_v19 = vadd.f32 %v597_v18, %v468_v14 }
 0x25f   :  { %v618_v20 = vadd.f32 %v1369_v9, %v610_v19 }
 0x261   :  { %v623_v23 = vmax.f32 %v618_v20, 0.0 }
 0x263   :  { %1294 = vmatmul.msk.f32.gmra.mxu2 %vm630_vm6, %v623_v23 }
 0x264   :  { %v600_v26 = vpop.f32.mrf.mxu1 }
 0x265   :  { %v611_v28 = vadd.f32 %v600_v26, %v471_v24  ;;  %v1335_v26 = vld [vmem:[%s2073_s9 + $0xb0] sm:$0xff] }
 0x266   :  { %927 = vmatpush.msrb.mxu3 %v1335_v26 }
 0x267   :  { %v619_v29 = vadd.f32 %v1369_v9, %v611_v28 }
 0x269   :  { %v624_v30 = vmax.f32 %v619_v29, 0.0  ;;  %v1334_v29 = vld [vmem:[%s2073_s9 + $0xa8] sm:$0xff] }
 0x26a   :  { %928 = vmatpush.msrb.mxu3 %v1334_v29 }
 0x26b   :  { %1295 = vmatmul.msk.f32.gmra.mxu2 %vm630_vm6, %v624_v30 }
 0x26c   :  { %v603_v37 = vpop.f32.mrf.mxu1  ;;  %929 = vmatpush.msrb.mxu3 %v1333_v40  ;;  %v1371_v40 = vld [vmem:[%s2072_s10 + $0x1] ss:$0 sm:$0xff] }
 0x26d   :  { %v612_v38 = vadd.f32 %v603_v37, %v474_v36 }
 0x26f   :  { %v620_v41 = vadd.f32 %v1369_v9, %v612_v38 }
 0x271   :  { %v625_v42 = vmax.f32 %v620_v41, 0.0 }
 0x273   :  { %1296 = vmatmul.msk.f32.gmra.mxu2 %vm630_vm6, %v625_v42 }
 0x274   :  { %v606_v47 = vpop.f32.mrf.mxu1 }
 0x275   :  { %v613_v49 = vadd.f32 %v606_v47, %v477_v44 }
 0x277   :  { %v621_v50 = vadd.f32 %v1369_v9, %v613_v49  ;;  %v1332_v49 = vld [vmem:[%s2073_s9 + $0x98] sm:$0xff] }
 0x278   :  { %930 = vmatpush.msrb.mxu3 %v1332_v49 }
 0x279   :  { %v626_v51 = vmax.f32 %v621_v50, 0.0  ;;  %v1331_v50 = vld [vmem:[%s2073_s9 + $0x90] sm:$0xff] }
 0x27a   :  { %931 = vmatpush.msrb.mxu3 %v1331_v50 }
 0x27b   :  { %1297 = vmatmul.msk.f32.gmra.mxu2 %vm630_vm6, %v626_v51 }
 0x27c   :  { %932 = vmatpush.msrb.mxu3 %v1330_v54 }
 0x27e   :  { %933 = vmatpush.msrb.mxu3 %v1329_v33 }
 0x2de   :  { %v663_v9 = vpop.f32.mrf.mxu2 }
 0x2df   :  { %v664_v10 = vadd.f32 %v1370_v8, %v663_v9 }
 0x2e1   :  { %v683_v11 = vmul.f32 0.044715, %v664_v10  ;;  %v678_v38 = vmul.f32 0.5, %v664_v10 }
 0x2e3   :  { %v688_v12 = vmul.f32 %v683_v11, %v664_v10 }
 0x2e5   :  { %v693_v13 = vmul.f32 %v688_v12, %v664_v10 }
 0x2e6   :  { %v666_v14 = vpop.f32.mrf.mxu2 }
 0x2e7   :  { %v698_v15 = vadd.f32 %v693_v13, %v664_v10  ;;  %v667_v17 = vadd.f32 %v1370_v8, %v666_v14 }
 0x2e9   :  { %v703_v18 = vmul.f32 0.7978846, %v698_v15  ;;  %v684_v19 = vmul.f32 0.044715, %v667_v17  ;;  %v679_v61 = vmul.f32 0.5, %v667_v17 }
 0x2eb   :  { %1390 = vtanh.f32 %v703_v18  ;;  %v689_v20 = vmul.f32 %v684_v19, %v667_v17 }
 0x2ed   :  { %v694_v23 = vmul.f32 %v689_v20, %v667_v17 }
 0x2ee   :  { %v669_v24 = vpop.f32.mrf.mxu2 }
 0x2ef   :  { %v670_v27 = vadd.f32 %v1370_v8, %v669_v24  ;;  %v699_v28 = vadd.f32 %v694_v23, %v667_v17 }
 0x2f1   :  { %v1391_v30 = vpop.eup %1390  ;;  %v685_v36 = vmul.f32 0.044715, %v670_v27  ;;  %v704_v37 = vmul.f32 0.7978846, %v699_v28  ;;  %v680_v10 = vmul.f32 0.5, %v670_v27 }
 0x2f2   :  { %v713_v39 = vadd.f32 1.0, %v1391_v30 }
 0x2f3   :  { %1392 = vtanh.f32 %v704_v37  ;;  %v690_v41 = vmul.f32 %v685_v36, %v670_v27 }
 0x2f4   :  { %v718_v42 = vmul.f32 %v713_v39, %v678_v38 }
 0x2f5   :  { %v695_v44 = vmul.f32 %v690_v41, %v670_v27 }
 0x2f6   :  { %v672_v47 = vpop.f32.mrf.mxu2  ;;  %1298 = vmatmul.msk.f32.vlgmr.msra.gmra.mxu3 %vm630_vm6, %v718_v42  ;;  %1312 = vmatmul.msk.f32.vlgmr.msra.gmra.mxu0 %vm630_vm6, %v718_v42 }
 0x2f7   :  { %v673_v51 = vadd.f32 %v1370_v8, %v672_v47  ;;  %v700_v53 = vadd.f32 %v695_v44, %v670_v27  ;;  %v1372_v47 = vld [vmem:[%s2072_s10] ss:$0 sm:$0xff] }
 0x2f9   :  { %v1393_v56 = vpop.eup %1392  ;;  %v686_v58 = vmul.f32 0.044715, %v673_v51  ;;  %v705_v60 = vmul.f32 0.7978846, %v700_v53  ;;  %v681_v19 = vmul.f32 0.5, %v673_v51 }
 0x2fa   :  { %v714_v62 = vadd.f32 1.0, %v1393_v56 }
 0x2fb   :  { %1394 = vtanh.f32 %v705_v60  ;;  %v691_v34 = vmul.f32 %v686_v58, %v673_v51 }
 0x2fc   :  { %v719_v2 = vmul.f32 %v714_v62, %v679_v61 }
 0x2fd   :  { %v696_v3 = vmul.f32 %v691_v34, %v673_v51 }
 0x2fe   :  { %v675_v4 = vpop.f32.mrf.mxu2  ;;  %1299 = vmatmul.msk.f32.gmra.mxu3 %vm630_vm6, %v719_v2  ;;  %1313 = vmatmul.msk.f32.gmra.mxu0 %vm630_vm6, %v719_v2 }
 0x2ff   :  { %v676_v5 = vadd.f32 %v1370_v8, %v675_v4  ;;  %v701_v6 = vadd.f32 %v696_v3, %v673_v51  ;;  %v1374_v3 = vld [vmem:[%s2074_s11] ss:$0 sm:$0xff] }
 0x301   :  { %v1395_v7 = vpop.eup %1394  ;;  %v687_v35 = vmul.f32 0.044715, %v676_v5  ;;  %v706_v9 = vmul.f32 0.7978846, %v701_v6  ;;  %v682_v24 = vmul.f32 0.5, %v676_v5 }
 0x302   :  { %v715_v11 = vadd.f32 1.0, %v1395_v7 }
 0x303   :  { %1396 = vtanh.f32 %v706_v9  ;;  %v692_v12 = vmul.f32 %v687_v35, %v676_v5 }
 0x304   :  { %v720_v13 = vmul.f32 %v715_v11, %v680_v10 }
 0x305   :  { %v697_v14 = vmul.f32 %v692_v12, %v676_v5 }
 0x306   :  { %1300 = vmatmul.msk.f32.gmra.mxu3 %vm630_vm6, %v720_v13  ;;  %1314 = vmatmul.msk.f32.gmra.mxu0 %vm630_vm6, %v720_v13 }
 0x307   :  { %v702_v15 = vadd.f32 %v697_v14, %v676_v5 }
 0x309   :  { %v1397_v17 = vpop.eup %1396  ;;  %v707_v18 = vmul.f32 0.7978846, %v702_v15 }
 0x30a   :  { %v716_v20 = vadd.f32 1.0, %v1397_v17 }
 0x30b   :  { %1398 = vtanh.f32 %v707_v18 }
 0x30c   :  { %v721_v8 = vmul.f32 %v716_v20, %v681_v19 }
 0x30e   :  { %1301 = vmatmul.msk.f32.gmra.mxu3 %vm630_vm6, %v721_v8  ;;  %1315 = vmatmul.msk.f32.gmra.mxu0 %vm630_vm6, %v721_v8 }
 0x311   :  { %v1399_v23 = vpop.eup %1398 }
 0x312   :  { %v717_v25 = vadd.f32 1.0, %v1399_v23 }
 0x314   :  { %v722_v26 = vmul.f32 %v717_v25, %v682_v24 }
 0x316   :  { %1302 = vmatmul.msk.f32.gmra.mxu3 %vm630_vm6, %v722_v26  ;;  %1316 = vmatmul.msk.f32.gmra.mxu0 %vm630_vm6, %v722_v26 }
 0x31e   :  { %1338 = vmatmul.msk.f32.vlgmr.msrb.gmra.mxu3 %vm630_vm6, %v718_v42 }
 0x326   :  { %1339 = vmatmul.msk.f32.gmra.mxu3 %vm630_vm6, %v719_v2 }
 0x32e   :  { %1340 = vmatmul.msk.f32.gmra.mxu3 %vm630_vm6, %v720_v13 }
 0x336   :  { %1341 = vmatmul.msk.f32.gmra.mxu3 %vm630_vm6, %v721_v8 }
 0x33e   :  { %1342 = vmatmul.msk.f32.gmra.mxu3 %vm630_vm6, %v722_v26 }
 0x373   :  { %v819_v27 = vpop.f32.mrf.mxu0 }
 0x374   :  { %v820_v54 = vadd.f32 %v1371_v40, %v819_v27 }
 0x379   :  { %v773_v28 = vpop.f32.mrf.mxu3 }
 0x37a   :  { %v774_v62 = vadd.f32 %v1372_v47, %v773_v28 }
 0x37b   :  { %v822_v29 = vpop.f32.mrf.mxu0 }
 0x37c   :  { %v823_v51 = vadd.f32 %v1371_v40, %v822_v29 }
 0x381   :  { %v776_v30 = vpop.f32.mrf.mxu3 }
 0x382   :  { %v777_v60 = vadd.f32 %v1372_v47, %v776_v30 }
 0x383   :  { %v825_v36 = vpop.f32.mrf.mxu0 }
 0x384   :  { %v826_v49 = vadd.f32 %v1371_v40, %v825_v36 }
 0x389   :  { %v779_v37 = vpop.f32.mrf.mxu3 }
 0x38a   :  { %v780_v58 = vadd.f32 %v1372_v47, %v779_v37 }
 0x38b   :  { %v828_v38 = vpop.f32.mrf.mxu0 }
 0x38c   :  { %v829_v44 = vadd.f32 %v1371_v40, %v828_v38 }
 0x391   :  { %v782_v39 = vpop.f32.mrf.mxu3 }
 0x392   :  { %v783_v56 = vadd.f32 %v1372_v47, %v782_v39 }
 0x393   :  { %v831_v41 = vpop.f32.mrf.mxu0 }
 0x394   :  { %v832_v42 = vadd.f32 %v1371_v40, %v831_v41 }
 0x396   :  { %1317 = vmatpush.msk.msra.mxu1 %vm361_vm4, %v832_v42  ;;  %v1375_v42 = vld [vmem:[%s2075_s13] ss:$0 sm:$0xff] }
 0x398   :  { %849 = vmatpush.msra.mxu1 %v829_v44 }
 0x399   :  { %v785_v50 = vpop.f32.mrf.mxu3 }
 0x39a   :  { %v786_v53 = vadd.f32 %v1372_v47, %v785_v50  ;;  %850 = vmatpush.msra.mxu1 %v826_v49 }
 0x39c   :  { %851 = vmatpush.msra.mxu1 %v823_v51  ;;  %1323 = vmatpush.msk.msrb.mxu2 %vm361_vm4, %v786_v53 }
 0x39e   :  { %852 = vmatpush.msra.mxu1 %v820_v54  ;;  %884 = vmatpush.msrb.mxu2 %v783_v56 }
 0x39f   :  { %1318 = vmatmul.msk.f32.vlgmr.msra.gmra.mxu1 %vm345_vm5, %v1717_v31 }
 0x3a0   :  { %885 = vmatpush.msrb.mxu2 %v780_v58 }
 0x3a1   :  { %v935_v61 = vpop.f32.mrf.mxu3 }
 0x3a2   :  { %886 = vmatpush.msrb.mxu2 %v777_v60 }
 0x3a4   :  { %887 = vmatpush.msrb.mxu2 %v774_v62 }
 0x3a5   :  { %1324 = vmatmul.msk.f32.vlgmr.msrb.gmra.mxu2 %vm345_vm5, %v1719_v32  ;;  %v1373_v32 = vld [vmem:[%s2072_s10 + $0x2] ss:$0 sm:$0xff] }
 0x3a7   :  { %1319 = vmatmul.msk.f32.gmra.mxu1 %vm345_vm5, %v1725_v43 }
 0x3a9   :  { %v938_v33 = vpop.f32.mrf.mxu3 }
 0x3ad   :  { %1325 = vmatmul.msk.f32.gmra.mxu2 %vm345_vm5, %v1727_v21 }
 0x3af   :  { %1320 = vmatmul.msk.f32.gmra.mxu1 %vm345_vm5, %v1733_v45 }
 0x3b1   :  { %v941_v31 = vpop.f32.mrf.mxu3 }
 0x3b5   :  { %1326 = vmatmul.msk.f32.gmra.mxu2 %vm345_vm5, %v1735_v46  ;;  %v942_v46 = vadd.f32 %v1373_v32, %v941_v31 }
 0x3b7   :  { %1321 = vmatmul.msk.f32.gmra.mxu1 %vm345_vm5, %v1741_v48  ;;  %v939_v48 = vadd.f32 %v1373_v32, %v938_v33 }
 0x3b9   :  { %v944_v34 = vpop.f32.mrf.mxu3 }
 0x3ba   :  { %v945_v45 = vadd.f32 %v1373_v32, %v944_v34 }
 0x3bd   :  { %1327 = vmatmul.msk.f32.gmra.mxu2 %vm345_vm5, %v1743_v22  ;;  %v936_v22 = vadd.f32 %v1373_v32, %v935_v61 }
 0x3bf   :  { %1322 = vmatmul.msk.f32.gmra.mxu1 %vm345_vm5, %v1755_v55  ;;  %v727_v55 = vld [vmem:[%s2076_s12 + $0x18] sm:$0xff] }
 0x3c0   :  { %1033 = vmatpush.msrb.mxu1 %v727_v55 }
 0x3c1   :  { %v947_v43 = vpop.f32.mrf.mxu3 }
 0x3c2   :  { %v948_v21 = vadd.f32 %v1373_v32, %v947_v43 }
 0x3c4   :  { %1343 = vmatpush.msk.msrb.mxu0 %vm361_vm4, %v948_v21 }
 0x3c5   :  { %1328 = vmatmul.msk.f32.gmra.mxu2 %vm345_vm5, %v1757_v57  ;;  %v725_v57 = vld [vmem:[%s2076_s12 + $0x8] sm:$0xff] }
 0x3c6   :  { %965 = vmatpush.msrb.mxu0 %v945_v45 }
 0x3c8   :  { %966 = vmatpush.msrb.mxu0 %v942_v46 }
 0x3ca   :  { %967 = vmatpush.msrb.mxu0 %v939_v48 }
 0x3cc   :  { %968 = vmatpush.msrb.mxu0 %v936_v22 }
 0x3cd   :  { %1344 = vmatmul.msk.f32.vlgmr.msrb.gmra.mxu0 %vm345_vm5, %v1748_v52  ;;  %v726_v52 = vld [vmem:[%s2076_s12 + $0x10] sm:$0xff] }
 0x3ce   :  { %1034 = vmatpush.msrb.mxu1 %v726_v52 }
 0x3d0   :  { %1035 = vmatpush.msrb.mxu1 %v725_v57 }
 0x3d5   :  { %1345 = vmatmul.msk.f32.gmra.mxu0 %vm345_vm5, %v1763_v59  ;;  %v724_v59 = vld [vmem:[%s2076_s12] sm:$0xff] }
 0x3d6   :  { %1036 = vmatpush.msrb.mxu1 %v724_v59 }
 0x3dd   :  { %1346 = vmatmul.msk.f32.gmra.mxu0 %vm345_vm5, %v1778_v63 }
 0x3e5   :  { %1347 = vmatmul.msk.f32.gmra.mxu0 %vm345_vm5, %v1782_v0 }
 0x3ed   :  { %1348 = vmatmul.msk.f32.gmra.mxu0 %vm345_vm5, %v1786_v1 }
 0x41c   :  { %v854_v0 = vpop.f32.mrf.mxu1 }
 0x424   :  { %v857_v4 = vpop.f32.mrf.mxu1 }
 0x428   :  { %v889_v63 = vpop.f32.mrf.mxu2 }
 0x429   :  { %v890_v2 = vadd.f32 %v889_v63, %v854_v0 }
 0x42c   :  { %v860_v13 = vpop.f32.mrf.mxu1 }
 0x430   :  { %v892_v1 = vpop.f32.mrf.mxu2 }
 0x431   :  { %v893_v9 = vadd.f32 %v892_v1, %v857_v4 }
 0x434   :  { %v863_v23 = vpop.f32.mrf.mxu1 }
 0x438   :  { %v895_v10 = vpop.f32.mrf.mxu2 }
 0x439   :  { %v896_v17 = vadd.f32 %v895_v10, %v860_v13 }
 0x43c   :  { %v866_v36 = vpop.f32.mrf.mxu1 }
 0x440   :  { %v898_v20 = vpop.f32.mrf.mxu2 }
 0x441   :  { %v899_v25 = vadd.f32 %v898_v20, %v863_v23 }
 0x448   :  { %v901_v29 = vpop.f32.mrf.mxu2 }
 0x449   :  { %v902_v37 = vadd.f32 %v901_v29, %v866_v36 }
 0x44a   :  { %v970_v5 = vpop.f32.mrf.mxu0 }
 0x44b   :  { %v985_v6 = vadd.f32 %v970_v5, %v890_v2 }
 0x44d   :  { %v993_v7 = vadd.f32 %v1374_v3, %v985_v6 }
 0x44f   :  { %v998_v35 = vmax.f32 %v993_v7, 0.0 }
 0x451   :  { %1349 = vmatmul.msk.f32.vlgmr.msrb.gmra.mxu1 %vm60_vm0, %v998_v35 }
 0x452   :  { %v973_v11 = vpop.f32.mrf.mxu0 }
 0x453   :  { %v986_v12 = vadd.f32 %v973_v11, %v893_v9 }
 0x455   :  { %v994_v14 = vadd.f32 %v1374_v3, %v986_v12 }
 0x457   :  { %v999_v15 = vmax.f32 %v994_v14, 0.0 }
 0x459   :  { %1350 = vmatmul.msk.f32.gmra.mxu1 %vm60_vm0, %v999_v15 }
 0x45a   :  { %v976_v18 = vpop.f32.mrf.mxu0 }
 0x45b   :  { %v987_v19 = vadd.f32 %v976_v18, %v896_v17 }
 0x45d   :  { %v995_v8 = vadd.f32 %v1374_v3, %v987_v19 }
 0x45f   :  { %v1000_v24 = vmax.f32 %v995_v8, 0.0 }
 0x461   :  { %1351 = vmatmul.msk.f32.gmra.mxu1 %vm60_vm0, %v1000_v24 }
 0x462   :  { %v979_v26 = vpop.f32.mrf.mxu0 }
 0x463   :  { %v988_v27 = vadd.f32 %v979_v26, %v899_v25 }
 0x465   :  { %v996_v28 = vadd.f32 %v1374_v3, %v988_v27 }
 0x467   :  { %v1001_v30 = vmax.f32 %v996_v28, 0.0 }
 0x469   :  { %1352 = vmatmul.msk.f32.gmra.mxu1 %vm60_vm0, %v1001_v30 }
 0x46a   :  { %v982_v38 = vpop.f32.mrf.mxu0 }
 0x46b   :  { %v989_v39 = vadd.f32 %v982_v38, %v902_v37 }
 0x46d   :  { %v997_v40 = vadd.f32 %v1374_v3, %v989_v39 }
 0x46f   :  { %v1002_v41 = vmax.f32 %v997_v40, 0.0 }
 0x471   :  { %1353 = vmatmul.msk.f32.gmra.mxu1 %vm60_vm0, %v1002_v41 }
 0x4ce   :  { %v1038_v44 = vpop.f32.mrf.mxu1 }
 0x4cf   :  { %v1039_v47 = vadd.f32 %v1375_v42, %v1038_v44 }
 0x4d1   :  { %v1058_v49 = vmul.f32 0.044715, %v1039_v47  ;;  %v1053_v45 = vmul.f32 0.5, %v1039_v47 }
 0x4d3   :  { %v1063_v50 = vmul.f32 %v1058_v49, %v1039_v47 }
 0x4d5   :  { %v1068_v51 = vmul.f32 %v1063_v50, %v1039_v47 }
 0x4d6   :  { %v1041_v53 = vpop.f32.mrf.mxu1 }
 0x4d7   :  { %v1042_v54 = vadd.f32 %v1375_v42, %v1041_v53  ;;  %v1073_v56 = vadd.f32 %v1068_v51, %v1039_v47 }
 0x4d9   :  { %v1059_v58 = vmul.f32 0.044715, %v1042_v54  ;;  %v1078_v60 = vmul.f32 0.7978846, %v1073_v56  ;;  %v1054_v3 = vmul.f32 0.5, %v1042_v54 }
 0x4db   :  { %1400 = vtanh.f32 %v1078_v60  ;;  %v1064_v61 = vmul.f32 %v1059_v58, %v1042_v54 }
 0x4dd   :  { %v1069_v62 = vmul.f32 %v1064_v61, %v1042_v54 }
 0x4de   :  { %v1044_v33 = vpop.f32.mrf.mxu1 }
 0x4df   :  { %v1045_v31 = vadd.f32 %v1375_v42, %v1044_v33  ;;  %v1074_v34 = vadd.f32 %v1069_v62, %v1042_v54 }
 0x4e1   :  { %v1401_v32 = vpop.eup %1400  ;;  %v1060_v43 = vmul.f32 0.044715, %v1045_v31  ;;  %v1079_v21 = vmul.f32 0.7978846, %v1074_v34  ;;  %v1055_v15 = vmul.f32 0.5, %v1045_v31 }
 0x4e2   :  { %v1088_v46 = vadd.f32 1.0, %v1401_v32 }
 0x4e3   :  { %1402 = vtanh.f32 %v1079_v21  ;;  %v1065_v48 = vmul.f32 %v1060_v43, %v1045_v31 }
 0x4e4   :  { %v1093_v22 = vmul.f32 %v1088_v46, %v1053_v45 }
 0x4e5   :  { %v1070_v55 = vmul.f32 %v1065_v48, %v1045_v31 }
 0x4e6   :  { %v1047_v52 = vpop.f32.mrf.mxu1  ;;  %v1100_v57 = vsel %vm60_vm0, %v1093_v22, 0.0 }
 0x4e7   :  { %v1048_v59 = vadd.f32 %v1375_v42, %v1047_v52  ;;  %1101 = vadd.xlane.f32.xlu2 %v1100_v57  ;;  %v1075_v63 = vadd.f32 %v1070_v55, %v1045_v31 }
 0x4e9   :  { %v1403_v0 = vpop.eup %1402  ;;  %v1061_v1 = vmul.f32 0.044715, %v1048_v59  ;;  %v1080_v2 = vmul.f32 0.7978846, %v1075_v63  ;;  %v1056_v26 = vmul.f32 0.5, %v1048_v59 }
 0x4ea   :  { %v1089_v4 = vadd.f32 1.0, %v1403_v0 }
 0x4eb   :  { %1404 = vtanh.f32 %v1080_v2  ;;  %v1066_v5 = vmul.f32 %v1061_v1, %v1048_v59 }
 0x4ec   :  { %v1094_v6 = vmul.f32 %v1089_v4, %v1054_v3 }
 0x4ed   :  { %v1071_v7 = vmul.f32 %v1066_v5, %v1048_v59 }
 0x4ee   :  { %v1050_v35 = vpop.f32.mrf.mxu1  ;;  %v1103_v9 = vsel %vm60_vm0, %v1094_v6, 0.0 }
 0x4ef   :  { %v1051_v10 = vadd.f32 %v1375_v42, %v1050_v35  ;;  %1104 = vadd.xlane.f32.xlu0 %v1103_v9  ;;  %v1076_v11 = vadd.f32 %v1071_v7, %v1048_v59 }
 0x4f1   :  { %v1405_v12 = vpop.eup %1404  ;;  %v1062_v13 = vmul.f32 0.044715, %v1051_v10  ;;  %v1081_v14 = vmul.f32 0.7978846, %v1076_v11  ;;  %v1057_v36 = vmul.f32 0.5, %v1051_v10 }
 0x4f2   :  { %v1090_v17 = vadd.f32 1.0, %v1405_v12  ;;  %v2005_v12 = vld [vmem:[%s2077_s14] ss:$0 sm:$0xff] }
 0x4f3   :  { %1406 = vtanh.f32 %v1081_v14  ;;  %v1067_v18 = vmul.f32 %v1062_v13, %v1051_v10 }
 0x4f4   :  { %v1095_v19 = vmul.f32 %v1090_v17, %v1055_v15  ;;  %v2010_v15 = vld [vmem:[%s2078_s15] ss:$0 sm:$0xff] }
 0x4f5   :  { %v1072_v20 = vmul.f32 %v1067_v18, %v1051_v10 }
 0x4f6   :  { %v1106_v8 = vsel %vm60_vm0, %v1095_v19, 0.0 }
 0x4f7   :  { %1107 = vadd.xlane.f32.xlu1 %v1106_v8  ;;  %v1077_v23 = vadd.f32 %v1072_v20, %v1051_v10 }
 0x4f9   :  { %v1407_v24 = vpop.eup %1406  ;;  %v1082_v25 = vmul.f32 0.7978846, %v1077_v23 }
 0x4fa   :  { %v1091_v27 = vadd.f32 1.0, %v1407_v24 }
 0x4fb   :  { %1408 = vtanh.f32 %v1082_v25 }
 0x4fc   :  { %v1096_v28 = vmul.f32 %v1091_v27, %v1056_v26 }
 0x4fe   :  { %v1109_v29 = vsel %vm60_vm0, %v1096_v28, 0.0 }
 0x4ff   :  { %1110 = vadd.xlane.f32.xlu1 %v1109_v29  ;;  %v1420_v29 = vld [vmem:[%s2082_s23] sm:$0xff] }
 0x501   :  { %v1409_v30 = vpop.eup %1408 }
 0x502   :  { %v1092_v37 = vadd.f32 1.0, %v1409_v30 }
 0x504   :  { %v1097_v38 = vmul.f32 %v1092_v37, %v1057_v36 }
 0x506   :  { %v1112_v39 = vsel %vm73_vm1, %v1097_v38, 0.0 }
 0x507   :  { %1113 = vadd.xlane.f32.xlu2 %v1112_v39 }
 0x55a   :  { %v1102_v40 = vpop.xlane.xlu2 %1101 }
 0x55b   :  { %v1115_v41 = vmul.f32 %v1102_v40, %v1531_v16 }
 0x55d   :  { %v1120_v42 = vsub.f32 %v1093_v22, %v1115_v41 }
 0x55f   :  { %v1125_v44 = vmul.f32 %v1120_v42, %v1120_v42 }
 0x561   :  { %v1130_v47 = vsel %vm60_vm0, %v1125_v44, 0.0 }
 0x562   :  { %v1105_v49 = vpop.xlane.xlu0 %1104  ;;  %1131 = vadd.xlane.f32.xlu0 %v1130_v47 }
 0x563   :  { %v1116_v50 = vmul.f32 %v1105_v49, %v1531_v16 }
 0x565   :  { %v1976_v51 = vsub.f32 %v1094_v6, %v1116_v50 }
 0x567   :  { %v1126_v53 = vmul.f32 %v1976_v51, %v1976_v51 }
 0x569   :  { %v1133_v54 = vsel %vm60_vm0, %v1126_v53, 0.0 }
 0x56a   :  { %v1108_v56 = vpop.xlane.xlu1 %1107  ;;  %1134 = vadd.xlane.f32.xlu1 %v1133_v54 }
 0x56b   :  { %v1117_v58 = vmul.f32 %v1108_v56, %v1531_v16  ;;  %v1421_v56 = vld [vmem:[%s2082_s23 + $0x8] sm:$0xff] }
 0x56d   :  { %v1982_v60 = vsub.f32 %v1095_v19, %v1117_v58 }
 0x56f   :  { %v1127_v61 = vmul.f32 %v1982_v60, %v1982_v60 }
 0x571   :  { %v1136_v62 = vsel %vm60_vm0, %v1127_v61, 0.0 }
 0x572   :  { %v1111_v33 = vpop.xlane.xlu1 %1110  ;;  %1137 = vadd.xlane.f32.xlu2 %v1136_v62 }
 0x573   :  { %v1118_v31 = vmul.f32 %v1111_v33, %v1531_v16 }
 0x575   :  { %v1988_v34 = vsub.f32 %v1096_v28, %v1118_v31 }
 0x577   :  { %v1128_v32 = vmul.f32 %v1988_v34, %v1988_v34 }
 0x579   :  { %v1139_v43 = vsel %vm60_vm0, %v1128_v32, 0.0 }
 0x57a   :  { %1140 = vadd.xlane.f32.xlu0 %v1139_v43  ;;  %v1114_v21 = vpop.xlane.xlu2 %1113 }
 0x57b   :  { %v1119_v45 = vmul.f32 %v1114_v21, %v1531_v16 }
 0x57d   :  { %v1994_v46 = vsub.f32 %v1097_v38, %v1119_v45 }
 0x57f   :  { %v1129_v48 = vmul.f32 %v1994_v46, %v1994_v46 }
 0x581   :  { %v1142_v22 = vsel %vm73_vm1, %v1129_v48, 0.0  ;;  %v1422_v48 = vld [vmem:[%s2082_s23 + $0x10] sm:$0xff] }
 0x582   :  { %1143 = vadd.xlane.f32.xlu1 %v1142_v22 }
 0x5d5   :  { %v1132_v55 = vpop.xlane.xlu0 %1131 }
 0x5d6   :  { %v1145_v52 = vmul.f32 %v1132_v55, %v1531_v16 }
 0x5d8   :  { %v1150_v57 = vadd.f32 1e-05, %v1145_v52 }
 0x5da   :  { %1410 = vrsqrt.f32 %v1150_v57  ;;  %vm1161_vm8 = vweird.f32 %v1150_v57 }
 0x5dd   :  { %v1135_v59 = vpop.xlane.xlu1 %1134 }
 0x5de   :  { %v1146_v63 = vmul.f32 %v1135_v59, %v1531_v16 }
 0x5e0   :  { %v1411_v0 = vpop.eup %1410  ;;  %v1151_v1 = vadd.f32 1e-05, %v1146_v63 }
 0x5e1   :  { %v1156_v2 = vmul.f32 %v1411_v0, %v1150_v57  ;;  %vm1162_vm7 = vweird.f32 %v1411_v0 }
 0x5e2   :  { %1412 = vrsqrt.f32 %v1151_v1  ;;  %vm1163_vm9 = vmor %vm1161_vm8, %vm1162_vm7  ;;  %vm1171_vm11 = vweird.f32 %v1151_v1 }
 0x5e3   :  { %v1157_v3 = vmul.f32 %v1411_v0, %v1156_v2  ;;  %v1423_v2 = vld [vmem:[%s2082_s23 + $0x18] sm:$0xff] }
 0x5e5   :  { %v1158_v4 = vmul.f32 0.5, %v1157_v3  ;;  %v1138_v5 = vpop.xlane.xlu2 %1137 }
 0x5e6   :  { %v1147_v6 = vmul.f32 %v1138_v5, %v1531_v16 }
 0x5e7   :  { %v1159_v7 = vsub.f32 1.5, %v1158_v4 }
 0x5e8   :  { %v1413_v35 = vpop.eup %1412  ;;  %v1152_v9 = vadd.f32 1e-05, %v1147_v6 }
 0x5e9   :  { %v1160_v10 = vmul.f32 %v1411_v0, %v1159_v7  ;;  %v1166_v11 = vmul.f32 %v1413_v35, %v1151_v1  ;;  %vm1172_vm10 = vweird.f32 %v1413_v35  ;;  %v1424_v7 = vld [vmem:[%s2082_s23 + $0x20] sm:$0x3] }
 0x5ea   :  { %1414 = vrsqrt.f32 %v1152_v9  ;;  %vm1173_vm12 = vmor %vm1171_vm11, %vm1172_vm10  ;;  %vm1181_vm14 = vweird.f32 %v1152_v9 }
 0x5eb   :  { %v1164_v13 = vsel %vm1163_vm9, %v1411_v0, %v1160_v10  ;;  %v1167_v14 = vmul.f32 %v1413_v35, %v1166_v11 }
 0x5ec   :  { %v1205_v17 = vmul.f32 %v1164_v13, %v1120_v42 }
 0x5ed   :  { %v1168_v18 = vmul.f32 0.5, %v1167_v14  ;;  %v1141_v19 = vpop.xlane.xlu0 %1140 }
 0x5ee   :  { %v1213_v20 = vmul.f32 %v2005_v12, %v1205_v17  ;;  %v1148_v8 = vmul.f32 %v1141_v19, %v1531_v16 }
 0x5ef   :  { %v1169_v23 = vsub.f32 1.5, %v1168_v18 }
 0x5f0   :  { %v1415_v24 = vpop.eup %1414  ;;  %v1221_v25 = vadd.f32 %v2010_v15, %v1213_v20  ;;  %v1153_v26 = vadd.f32 1e-05, %v1148_v8 }
 0x5f1   :  { %v1170_v27 = vmul.f32 %v1413_v35, %v1169_v23  ;;  %v1176_v28 = vmul.f32 %v1415_v24, %v1152_v9  ;;  %vm1182_vm13 = vweird.f32 %v1415_v24 }
 0x5f2   :  { %v1226_v30 = vadd.f32 %v1420_v29, %v1221_v25  ;;  %1416 = vrsqrt.f32 %v1153_v26  ;;  %vm1183_vm15 = vmor %vm1181_vm14, %vm1182_vm13  ;;  %vm1191_vm3 = vweird.f32 %v1153_v26 }
 0x5f3   :  { %v1174_v36 = vsel %vm1173_vm12, %v1413_v35, %v1170_v27  ;;  %v1177_v37 = vmul.f32 %v1415_v24, %v1176_v28 }
 0x5f4   :  { %1231 = vst.msk [vmem:[%s2079_s16] sm:$0xff] %vm60_vm0, %v1226_v30  ;;  %v1206_v38 = vmul.f32 %v1174_v36, %v1976_v51 }
 0x5f5   :  { %v1178_v39 = vmul.f32 0.5, %v1177_v37  ;;  %v1144_v40 = vpop.xlane.xlu1 %1143 }
 0x5f6   :  { %v1214_v41 = vmul.f32 %v2005_v12, %v1206_v38  ;;  %v1149_v42 = vmul.f32 %v1144_v40, %v1531_v16 }
 0x5f7   :  { %v1179_v44 = vsub.f32 1.5, %v1178_v39 }
 0x5f8   :  { %v1417_v47 = vpop.eup %1416  ;;  %v1222_v49 = vadd.f32 %v2010_v15, %v1214_v41  ;;  %v1154_v50 = vadd.f32 1e-05, %v1149_v42 }
 0x5f9   :  { %v1180_v53 = vmul.f32 %v1415_v24, %v1179_v44  ;;  %v1186_v54 = vmul.f32 %v1417_v47, %v1153_v26  ;;  %vm1192_vm2 = vweird.f32 %v1417_v47 }
 0x5fa   :  { %v1227_v51 = vadd.f32 %v1421_v56, %v1222_v49  ;;  %1418 = vrsqrt.f32 %v1154_v50  ;;  %vm1193_vm4 = vmor %vm1191_vm3, %vm1192_vm2  ;;  %vm1201_vm6 = vweird.f32 %v1154_v50 }
 0x5fb   :  { %v1184_v58 = vsel %vm1183_vm15, %v1415_v24, %v1180_v53  ;;  %v1187_v61 = vmul.f32 %v1417_v47, %v1186_v54 }
 0x5fc   :  { %1232 = vst.msk [vmem:[%s2079_s16 + $0x8] sm:$0xff] %vm60_vm0, %v1227_v51  ;;  %v1207_v16 = vmul.f32 %v1184_v58, %v1982_v60 }
 0x5fd   :  { %v1188_v62 = vmul.f32 0.5, %v1187_v61 }
 0x5fe   :  { %v1215_v33 = vmul.f32 %v2005_v12, %v1207_v16 }
 0x5ff   :  { %v1189_v31 = vsub.f32 1.5, %v1188_v62 }
 0x600   :  { %v1419_v32 = vpop.eup %1418  ;;  %v1223_v43 = vadd.f32 %v2010_v15, %v1215_v33 }
 0x601   :  { %v1190_v21 = vmul.f32 %v1417_v47, %v1189_v31  ;;  %v1196_v45 = vmul.f32 %v1419_v32, %v1154_v50  ;;  %vm1202_vm5 = vweird.f32 %v1419_v32 }
 0x602   :  { %v1228_v22 = vadd.f32 %v1422_v48, %v1223_v43  ;;  %vm1203_vm7 = vmor %vm1201_vm6, %vm1202_vm5 }
 0x603   :  { %v1194_v55 = vsel %vm1193_vm4, %v1417_v47, %v1190_v21  ;;  %v1197_v52 = vmul.f32 %v1419_v32, %v1196_v45 }
 0x604   :  { %1233 = vst.msk [vmem:[%s2079_s16 + $0x10] sm:$0xff] %vm60_vm0, %v1228_v22  ;;  %v1208_v60 = vmul.f32 %v1194_v55, %v1988_v34 }
 0x605   :  { %v1198_v57 = vmul.f32 0.5, %v1197_v52 }
 0x606   :  { %v1216_v59 = vmul.f32 %v2005_v12, %v1208_v60 }
 0x607   :  { %v1199_v63 = vsub.f32 1.5, %v1198_v57 }
 0x608   :  { %v1224_v0 = vadd.f32 %v2010_v15, %v1216_v59 }
 0x609   :  { %v1200_v1 = vmul.f32 %v1419_v32, %v1199_v63 }
 0x60a   :  { %v1229_v3 = vadd.f32 %v1423_v2, %v1224_v0 }
 0x60b   :  { %v1204_v4 = vsel %vm1203_vm7, %v1419_v32, %v1200_v1 }
 0x60c   :  { %1234 = vst.msk [vmem:[%s2079_s16 + $0x18] sm:$0xff] %vm60_vm0, %v1229_v3  ;;  %v1209_v34 = vmul.f32 %v1204_v4, %v1994_v46 }
 0x60e   :  { %v1217_v5 = vmul.f32 %v2005_v12, %v1209_v34 }
 0x610   :  { %v1225_v6 = vadd.f32 %v2010_v15, %v1217_v5 }
 0x612   :  { %v1230_v35 = vadd.f32 %v1424_v7, %v1225_v6 }
 0x614   :  { %1235 = vst.msk [vmem:[%s2079_s16 + $0x20] sm:$0x3] %vm73_vm1, %v1230_v35 }

</bundles_post_ra>
